<compile_context>
chip_gen: v7x
topology: tpu7x:2x2x1
jax: 0.10.0
libtpu: 0.0.40
codegen_flags: <defaults>
</compile_context>

<pallas_src>
import functools

import jax
import jax.numpy as jnp
from jax import lax
from jax.experimental import pallas as pl
from jax.experimental.pallas import tpu as pltpu


def _round_up(x, m):
    return ((x + m - 1) // m) * m


def _focused_rank_kernel(ypt_ref, ytt_ref, ypo_ref, yto_ref, out_ref, acc_ref, *,
                         n_rows, k, thread, sigma, eps):
    i = pl.program_id(0)

    @pl.when(i == 0)
    def _init():
        acc_ref[0] = jnp.float32(0.0)
        acc_ref[1] = jnp.float32(0.0)

    tile_n = ypt_ref.shape[0]
    ko = ypo_ref.shape[1]

    # Row-validity mask for the (possibly partial) last tile.
    row_ids = i * tile_n + lax.broadcasted_iota(jnp.int32, (tile_n, 1), 0)
    valid = row_ids < n_rows                                        # [T, 1] bool
    valid_f = valid.astype(jnp.float32)

    # Per-tile load + upcast (inputs may be bf16 in HBM); zero out padded rows so the
    # exp/log below stay finite (padding contents are undefined).
    ypt = jnp.where(valid, ypt_ref[...].astype(jnp.float32), 0.0)   # [T, K]  pred, top-k (sorted by true desc)
    ytt = jnp.where(valid, ytt_ref[...].astype(jnp.float32), 0.0)   # [T, K]  true, top-k
    ypo = jnp.where(valid, ypo_ref[...].astype(jnp.float32), 0.0)   # [T, Ko] pred, others
    yto = jnp.where(valid, yto_ref[...].astype(jnp.float32), 0.0)   # [T, Ko] true, others

    run_exp = jnp.zeros((tile_n, 1), jnp.float32)    # suffix sum of exp(pred_topk)
    log_acc = jnp.zeros((tile_n, 1), jnp.float32)    # sum_j log(revcumsum_j + eps)
    bce_acc = jnp.zeros((tile_n, ko), jnp.float32)   # pairwise BCE accumulated over top-k index j

    # Fused static loop over the K top-k positions (K is small, e.g. 20). Computes the
    # listMLE reverse-cumsum-of-exp on the fly and the rank_net pairwise BCE one top-k
    # column at a time: no [T, K, Ko] 3-D intermediate, no explicit prob materialization.
    for j in range(k - 1, -1, -1):
        p_j = ypt[:, j:j + 1]                                       # [T, 1]
        t_j = ytt[:, j:j + 1]                                       # [T, 1]

        # ---- list_mle: reverse cumulative sum of exp, accumulated through log ----
        run_exp = run_exp + jnp.exp(p_j)
        log_acc = log_acc + jnp.log(run_exp + eps)

        # ---- rank_net: top-k item j vs all "other" items -------------------------
        dt = t_j - yto                                              # [T, Ko]
        sdp = sigma * (p_j - ypo)                                   # [T, Ko]
        one_minus_t = jnp.where(dt >= thread, 0.0,
                                jnp.where(dt <= -thread, 1.0, 0.5))
        # -t*log(sigmoid(sdp)) - (1-t)*log(1-sigmoid(sdp)) == log(1+exp(-sdp)) + (1-t)*sdp
        bce_acc = bce_acc + jnp.log(1.0 + jnp.exp(-sdp)) + one_minus_t * sdp

    # listMLE per-row loss: sum_j log(revcum_j + eps) - sum_j pred_j
    list_rows = log_acc - jnp.sum(ypt, axis=-1, keepdims=True)      # [T, 1]
    list_sum = jnp.sum(list_rows * valid_f)
    pair_sum = jnp.sum(bce_acc * valid_f)

    acc_ref[0] = acc_ref[0] + list_sum
    acc_ref[1] = acc_ref[1] + pair_sum

    # The last grid step's write is the final value (earlier writes are harmlessly overwritten).
    out_ref[0] = acc_ref[0]
    out_ref[1] = acc_ref[1]


def focused_rank_loss(y_pred, y_true, *, k=20, thread=1e-3, sigma=1.0,
                      max_tile_rows=256):
    """Pallas TPU implementation of focused_rank(k).forward(y_pred, y_true)."""
    assert y_pred.shape == y_true.shape and y_pred.ndim == 2
    n, l = y_pred.shape
    assert 0 < k < l

    # torch.sort(descending) + torch.gather equivalents — done in JAX (no Mosaic sort).
    order = jnp.argsort(-y_true, axis=-1)
    yp = jnp.take_along_axis(y_pred, order, axis=1)
    yt = jnp.take_along_axis(y_true, order, axis=1)
    yp_topk, yp_other = yp[:, :k], yp[:, k:]
    yt_topk, yt_other = yt[:, :k], yt[:, k:]
    ko = l - k

    tile_n = min(int(max_tile_rows), _round_up(n, 8))
    tile_n = max(8, (tile_n // 8) * 8)                # sublane-aligned row tiles
    grid = (pl.cdiv(n, tile_n),)

    kernel = functools.partial(
        _focused_rank_kernel, n_rows=n, k=k,
        thread=float(thread), sigma=float(sigma), eps=1e-10)

    bytes_in = sum(int(x.size) * x.dtype.itemsize
                   for x in (yp_topk, yt_topk, yp_other, yt_other))
    cost = pl.CostEstimate(
        flops=int(8 * n * k * ko + 8 * n * k),
        transcendentals=int(2 * n * k * ko + 2 * n * k),
        bytes_accessed=int(bytes_in + 8))

    sums = pl.pallas_call(
        kernel,
        out_shape=jax.ShapeDtypeStruct((2,), jnp.float32),
        grid=grid,
        in_specs=[
            pl.BlockSpec((tile_n, k), lambda i: (i, 0)),
            pl.BlockSpec((tile_n, k), lambda i: (i, 0)),
            pl.BlockSpec((tile_n, ko), lambda i: (i, 0)),
            pl.BlockSpec((tile_n, ko), lambda i: (i, 0)),
        ],
        out_specs=pl.BlockSpec((2,), lambda i: (0,), memory_space=pltpu.SMEM),
        scratch_shapes=[pltpu.SMEM((2,), jnp.float32)],
        compiler_params=pltpu.CompilerParams(
            dimension_semantics=("arbitrary",)),
        cost_estimate=cost,
    )(yp_topk, yt_topk, yp_other, yt_other)

    loss_list = sums[0] / jnp.float32(n)
    loss_pair = sums[1] / jnp.float32(n * k * ko) / jnp.float32(2.0)
    return loss_list + loss_pair


def _focused_rank_ref(y_pred, y_true, k=20, thread=1e-3, sigma=1.0):
    """Pure-JAX reference mirroring the PyTorch module."""
    order = jnp.argsort(-y_true, axis=-1)
    yp = jnp.take_along_axis(y_pred, order, axis=1)
    yt = jnp.take_along_axis(y_true, order, axis=1)
    yp_topk, yp_other = yp[:, :k], yp[:, k:]
    yt_topk, yt_other = yt[:, :k], yt[:, k:]

    # list_mle(y_pred_topk, y_true_topk); y_true_topk is already sorted descending.
    ps = yp_topk
    cums = jnp.flip(jnp.cumsum(jnp.flip(jnp.exp(ps), axis=1), axis=1), axis=1)
    loss_list = (jnp.log(cums + 1e-10) - ps).sum(axis=1).mean()

    # rank_net(y_pred_topk, y_pred_other, y_true_topk, y_true_other)
    dt = yt_topk[:, :, None] - yt_other[:, None, :]
    target = jnp.where(dt >= thread, 1.0, jnp.where(dt <= -thread, 0.0, 0.5))
    prob = 1.0 / (1.0 + jnp.exp(-sigma * (yp_topk[:, :, None] - yp_other[:, None, :])))
    bce = -target * jnp.log(prob) - (1.0 - target) * jnp.log(1.0 - prob)
    loss_pair = bce.mean() / 2.0
    return loss_list + loss_pair


if __name__ == "__main__":
    key = jax.random.PRNGKey(0)
    k1, k2 = jax.random.split(key)

    N, L, K = 20, 128, 20   # small shapes; K matches focused_rank's default k=20
    y_pred = jax.random.normal(k1, (N, L), dtype=jnp.float32)
    y_true = jax.random.normal(k2, (N, L), dtype=jnp.float32)

    # max_tile_rows=8 -> 3 grid steps: exercises pipelining, SMEM accumulation and
    # the ragged-row mask (last tile has only 4 valid rows).
    out = jax.block_until_ready(
        focused_rank_loss(y_pred, y_true, k=K, max_tile_rows=8))
    ref = _focused_rank_ref(y_pred, y_true, k=K)

    assert jnp.isfinite(out), out
    assert jnp.allclose(out, ref, rtol=1e-4, atol=1e-4), (out, ref)
    print("KERNEL_OK")
</pallas_src>

<mosaic_0001>
module attributes {stable_mosaic.version = 11 : i64} {
  func.func @_focused_rank_kernel(%arg0: i32, %arg1: memref<8x20xf32, #tpu.memory_space<vmem>>, %arg2: memref<8x20xf32, #tpu.memory_space<vmem>>, %arg3: memref<8x108xf32, #tpu.memory_space<vmem>>, %arg4: memref<8x108xf32, #tpu.memory_space<vmem>>, %arg5: memref<2xf32, #tpu.memory_space<smem>>, %arg6: memref<2xf32, #tpu.memory_space<smem>>) attributes {dimension_semantics = [#tpu.dimension_semantics<arbitrary>], iteration_bounds = array<i64: 3>, scalar_prefetch = 0 : i64, scratch_operands = 1 : i64, tpu.core_type = #tpu.core_type<tc>, window_params = [{transform_indices = @transform_0, window_bounds = array<i64: 8, 20>}, {transform_indices = @transform_1, window_bounds = array<i64: 8, 20>}, {transform_indices = @transform_2, window_bounds = array<i64: 8, 108>}, {transform_indices = @transform_3, window_bounds = array<i64: 8, 108>}, {transform_indices = @transform_4, window_bounds = array<i64: 2>}]} {
    %c0_i32 = arith.constant 0 : i32
    %0 = arith.cmpi eq, %arg0, %c0_i32 : i32
    %1 = arith.extui %0 : i1 to i32
    %c0_i32_0 = arith.constant 0 : i32
    %2 = arith.cmpi ne, %1, %c0_i32_0 : i32
    scf.if %2 {
      %cst_204 = arith.constant 0.000000e+00 : f32
      %c0_205 = arith.constant 0 : index
      %698 = memref.load %arg6[%c0_205] : memref<2xf32, #tpu.memory_space<smem>>
      memref.store %cst_204, %arg6[%c0_205] : memref<2xf32, #tpu.memory_space<smem>>
      %cst_206 = arith.constant 0.000000e+00 : f32
      %c1_207 = arith.constant 1 : index
      %699 = memref.load %arg6[%c1_207] : memref<2xf32, #tpu.memory_space<smem>>
      memref.store %cst_206, %arg6[%c1_207] : memref<2xf32, #tpu.memory_space<smem>>
    } else {
    }
    %c8_i32 = arith.constant 8 : i32
    %3 = arith.muli %arg0, %c8_i32 : i32
    %4 = tpu.iota {dimensions = array<i32: 0>} : vector<8x1xi32>
    %5 = vector.broadcast %3 : i32 to vector<8x1xi32>
    %6 = arith.addi %5, %4 : vector<8x1xi32>
    %c20_i32 = arith.constant 20 : i32
    %7 = vector.broadcast %c20_i32 : i32 to vector<8x1xi32>
    %8 = arith.cmpi slt, %6, %7 : vector<8x1xi32>
    %9 = arith.extui %8 : vector<8x1xi1> to vector<8x1xi32>
    %10 = arith.sitofp %9 : vector<8x1xi32> to vector<8x1xf32>
    %c0 = arith.constant 0 : index
    %c0_1 = arith.constant 0 : index
    %11 = vector.load %arg1[%c0, %c0_1] : memref<8x20xf32, #tpu.memory_space<vmem>>, vector<8x20xf32>
    %cst = arith.constant 0.000000e+00 : f32
    %12 = vector.shape_cast %8 : vector<8x1xi1> to vector<8x1xi1>
    %13 = vector.broadcast %12 : vector<8x1xi1> to vector<8x20xi1>
    %14 = vector.broadcast %cst : f32 to vector<8x20xf32>
    %15 = arith.select %13, %11, %14 : vector<8x20xi1>, vector<8x20xf32>
    %c0_2 = arith.constant 0 : index
    %c0_3 = arith.constant 0 : index
    %16 = vector.load %arg2[%c0_2, %c0_3] : memref<8x20xf32, #tpu.memory_space<vmem>>, vector<8x20xf32>
    %cst_4 = arith.constant 0.000000e+00 : f32
    %17 = vector.shape_cast %8 : vector<8x1xi1> to vector<8x1xi1>
    %18 = vector.broadcast %17 : vector<8x1xi1> to vector<8x20xi1>
    %19 = vector.broadcast %cst_4 : f32 to vector<8x20xf32>
    %20 = arith.select %18, %16, %19 : vector<8x20xi1>, vector<8x20xf32>
    %c0_5 = arith.constant 0 : index
    %c0_6 = arith.constant 0 : index
    %21 = vector.load %arg3[%c0_5, %c0_6] : memref<8x108xf32, #tpu.memory_space<vmem>>, vector<8x108xf32>
    %cst_7 = arith.constant 0.000000e+00 : f32
    %22 = vector.shape_cast %8 : vector<8x1xi1> to vector<8x1xi1>
    %23 = vector.broadcast %22 : vector<8x1xi1> to vector<8x108xi1>
    %24 = vector.broadcast %cst_7 : f32 to vector<8x108xf32>
    %25 = arith.select %23, %21, %24 : vector<8x108xi1>, vector<8x108xf32>
    %c0_8 = arith.constant 0 : index
    %c0_9 = arith.constant 0 : index
    %26 = vector.load %arg4[%c0_8, %c0_9] : memref<8x108xf32, #tpu.memory_space<vmem>>, vector<8x108xf32>
    %cst_10 = arith.constant 0.000000e+00 : f32
    %27 = vector.shape_cast %8 : vector<8x1xi1> to vector<8x1xi1>
    %28 = vector.broadcast %27 : vector<8x1xi1> to vector<8x108xi1>
    %29 = vector.broadcast %cst_10 : f32 to vector<8x108xf32>
    %30 = arith.select %28, %26, %29 : vector<8x108xi1>, vector<8x108xf32>
    %cst_11 = arith.constant 0.000000e+00 : f32
    %31 = vector.broadcast %cst_11 : f32 to vector<8x1xf32>
    %cst_12 = arith.constant 0.000000e+00 : f32
    %32 = vector.broadcast %cst_12 : f32 to vector<8x1xf32>
    %cst_13 = arith.constant 0.000000e+00 : f32
    %33 = vector.broadcast %cst_13 : f32 to vector<8x108xf32>
    %34 = vector.extract_strided_slice %15 {offsets = [0, 19], sizes = [8, 1], strides = [1, 1]} : vector<8x20xf32> to vector<8x1xf32>
    %35 = vector.extract_strided_slice %20 {offsets = [0, 19], sizes = [8, 1], strides = [1, 1]} : vector<8x20xf32> to vector<8x1xf32>
    %36 = math.exp %34 : vector<8x1xf32>
    %37 = arith.addf %31, %36 : vector<8x1xf32>
    %cst_14 = arith.constant 1.000000e-10 : f32
    %38 = vector.broadcast %cst_14 : f32 to vector<8x1xf32>
    %39 = arith.addf %37, %38 : vector<8x1xf32>
    %40 = math.log %39 : vector<8x1xf32>
    %41 = arith.addf %32, %40 : vector<8x1xf32>
    %42 = vector.broadcast %35 : vector<8x1xf32> to vector<8x108xf32>
    %43 = arith.subf %42, %30 : vector<8x108xf32>
    %44 = vector.broadcast %34 : vector<8x1xf32> to vector<8x108xf32>
    %45 = arith.subf %44, %25 : vector<8x108xf32>
    %cst_15 = arith.constant 1.000000e+00 : f32
    %46 = vector.broadcast %cst_15 : f32 to vector<8x108xf32>
    %47 = arith.mulf %46, %45 : vector<8x108xf32>
    %cst_16 = arith.constant 1.000000e-03 : f32
    %48 = vector.broadcast %cst_16 : f32 to vector<8x108xf32>
    %49 = arith.cmpf oge, %43, %48 : vector<8x108xf32>
    %cst_17 = arith.constant -1.000000e-03 : f32
    %50 = vector.broadcast %cst_17 : f32 to vector<8x108xf32>
    %51 = arith.cmpf ole, %43, %50 : vector<8x108xf32>
    %cst_18 = arith.constant 1.000000e+00 : f32
    %cst_19 = arith.constant 5.000000e-01 : f32
    %52 = vector.broadcast %cst_18 : f32 to vector<8x108xf32>
    %53 = vector.broadcast %cst_19 : f32 to vector<8x108xf32>
    %54 = arith.select %51, %52, %53 : vector<8x108xi1>, vector<8x108xf32>
    %cst_20 = arith.constant 0.000000e+00 : f32
    %55 = vector.broadcast %cst_20 : f32 to vector<8x108xf32>
    %56 = arith.select %49, %55, %54 : vector<8x108xi1>, vector<8x108xf32>
    %cst_21 = arith.constant 0.000000e+00 : f32
    %57 = vector.broadcast %cst_21 : f32 to vector<8x108xf32>
    %58 = arith.subf %57, %47 : vector<8x108xf32>
    %59 = math.exp %58 : vector<8x108xf32>
    %cst_22 = arith.constant 1.000000e+00 : f32
    %60 = vector.broadcast %cst_22 : f32 to vector<8x108xf32>
    %61 = arith.addf %60, %59 : vector<8x108xf32>
    %62 = math.log %61 : vector<8x108xf32>
    %63 = arith.addf %33, %62 : vector<8x108xf32>
    %64 = arith.mulf %56, %47 : vector<8x108xf32>
    %65 = arith.addf %63, %64 : vector<8x108xf32>
    %66 = vector.extract_strided_slice %15 {offsets = [0, 18], sizes = [8, 1], strides = [1, 1]} : vector<8x20xf32> to vector<8x1xf32>
    %67 = vector.extract_strided_slice %20 {offsets = [0, 18], sizes = [8, 1], strides = [1, 1]} : vector<8x20xf32> to vector<8x1xf32>
    %68 = math.exp %66 : vector<8x1xf32>
    %69 = arith.addf %37, %68 : vector<8x1xf32>
    %cst_23 = arith.constant 1.000000e-10 : f32
    %70 = vector.broadcast %cst_23 : f32 to vector<8x1xf32>
    %71 = arith.addf %69, %70 : vector<8x1xf32>
    %72 = math.log %71 : vector<8x1xf32>
    %73 = arith.addf %41, %72 : vector<8x1xf32>
    %74 = vector.broadcast %67 : vector<8x1xf32> to vector<8x108xf32>
    %75 = arith.subf %74, %30 : vector<8x108xf32>
    %76 = vector.broadcast %66 : vector<8x1xf32> to vector<8x108xf32>
    %77 = arith.subf %76, %25 : vector<8x108xf32>
    %cst_24 = arith.constant 1.000000e+00 : f32
    %78 = vector.broadcast %cst_24 : f32 to vector<8x108xf32>
    %79 = arith.mulf %78, %77 : vector<8x108xf32>
    %cst_25 = arith.constant 1.000000e-03 : f32
    %80 = vector.broadcast %cst_25 : f32 to vector<8x108xf32>
    %81 = arith.cmpf oge, %75, %80 : vector<8x108xf32>
    %cst_26 = arith.constant -1.000000e-03 : f32
    %82 = vector.broadcast %cst_26 : f32 to vector<8x108xf32>
    %83 = arith.cmpf ole, %75, %82 : vector<8x108xf32>
    %cst_27 = arith.constant 1.000000e+00 : f32
    %cst_28 = arith.constant 5.000000e-01 : f32
    %84 = vector.broadcast %cst_27 : f32 to vector<8x108xf32>
    %85 = vector.broadcast %cst_28 : f32 to vector<8x108xf32>
    %86 = arith.select %83, %84, %85 : vector<8x108xi1>, vector<8x108xf32>
    %cst_29 = arith.constant 0.000000e+00 : f32
    %87 = vector.broadcast %cst_29 : f32 to vector<8x108xf32>
    %88 = arith.select %81, %87, %86 : vector<8x108xi1>, vector<8x108xf32>
    %cst_30 = arith.constant 0.000000e+00 : f32
    %89 = vector.broadcast %cst_30 : f32 to vector<8x108xf32>
    %90 = arith.subf %89, %79 : vector<8x108xf32>
    %91 = math.exp %90 : vector<8x108xf32>
    %cst_31 = arith.constant 1.000000e+00 : f32
    %92 = vector.broadcast %cst_31 : f32 to vector<8x108xf32>
    %93 = arith.addf %92, %91 : vector<8x108xf32>
    %94 = math.log %93 : vector<8x108xf32>
    %95 = arith.addf %65, %94 : vector<8x108xf32>
    %96 = arith.mulf %88, %79 : vector<8x108xf32>
    %97 = arith.addf %95, %96 : vector<8x108xf32>
    %98 = vector.extract_strided_slice %15 {offsets = [0, 17], sizes = [8, 1], strides = [1, 1]} : vector<8x20xf32> to vector<8x1xf32>
    %99 = vector.extract_strided_slice %20 {offsets = [0, 17], sizes = [8, 1], strides = [1, 1]} : vector<8x20xf32> to vector<8x1xf32>
    %100 = math.exp %98 : vector<8x1xf32>
    %101 = arith.addf %69, %100 : vector<8x1xf32>
    %cst_32 = arith.constant 1.000000e-10 : f32
    %102 = vector.broadcast %cst_32 : f32 to vector<8x1xf32>
    %103 = arith.addf %101, %102 : vector<8x1xf32>
    %104 = math.log %103 : vector<8x1xf32>
    %105 = arith.addf %73, %104 : vector<8x1xf32>
    %106 = vector.broadcast %99 : vector<8x1xf32> to vector<8x108xf32>
    %107 = arith.subf %106, %30 : vector<8x108xf32>
    %108 = vector.broadcast %98 : vector<8x1xf32> to vector<8x108xf32>
    %109 = arith.subf %108, %25 : vector<8x108xf32>
    %cst_33 = arith.constant 1.000000e+00 : f32
    %110 = vector.broadcast %cst_33 : f32 to vector<8x108xf32>
    %111 = arith.mulf %110, %109 : vector<8x108xf32>
    %cst_34 = arith.constant 1.000000e-03 : f32
    %112 = vector.broadcast %cst_34 : f32 to vector<8x108xf32>
    %113 = arith.cmpf oge, %107, %112 : vector<8x108xf32>
    %cst_35 = arith.constant -1.000000e-03 : f32
    %114 = vector.broadcast %cst_35 : f32 to vector<8x108xf32>
    %115 = arith.cmpf ole, %107, %114 : vector<8x108xf32>
    %cst_36 = arith.constant 1.000000e+00 : f32
    %cst_37 = arith.constant 5.000000e-01 : f32
    %116 = vector.broadcast %cst_36 : f32 to vector<8x108xf32>
    %117 = vector.broadcast %cst_37 : f32 to vector<8x108xf32>
    %118 = arith.select %115, %116, %117 : vector<8x108xi1>, vector<8x108xf32>
    %cst_38 = arith.constant 0.000000e+00 : f32
    %119 = vector.broadcast %cst_38 : f32 to vector<8x108xf32>
    %120 = arith.select %113, %119, %118 : vector<8x108xi1>, vector<8x108xf32>
    %cst_39 = arith.constant 0.000000e+00 : f32
    %121 = vector.broadcast %cst_39 : f32 to vector<8x108xf32>
    %122 = arith.subf %121, %111 : vector<8x108xf32>
    %123 = math.exp %122 : vector<8x108xf32>
    %cst_40 = arith.constant 1.000000e+00 : f32
    %124 = vector.broadcast %cst_40 : f32 to vector<8x108xf32>
    %125 = arith.addf %124, %123 : vector<8x108xf32>
    %126 = math.log %125 : vector<8x108xf32>
    %127 = arith.addf %97, %126 : vector<8x108xf32>
    %128 = arith.mulf %120, %111 : vector<8x108xf32>
    %129 = arith.addf %127, %128 : vector<8x108xf32>
    %130 = vector.extract_strided_slice %15 {offsets = [0, 16], sizes = [8, 1], strides = [1, 1]} : vector<8x20xf32> to vector<8x1xf32>
    %131 = vector.extract_strided_slice %20 {offsets = [0, 16], sizes = [8, 1], strides = [1, 1]} : vector<8x20xf32> to vector<8x1xf32>
    %132 = math.exp %130 : vector<8x1xf32>
    %133 = arith.addf %101, %132 : vector<8x1xf32>
    %cst_41 = arith.constant 1.000000e-10 : f32
    %134 = vector.broadcast %cst_41 : f32 to vector<8x1xf32>
    %135 = arith.addf %133, %134 : vector<8x1xf32>
    %136 = math.log %135 : vector<8x1xf32>
    %137 = arith.addf %105, %136 : vector<8x1xf32>
    %138 = vector.broadcast %131 : vector<8x1xf32> to vector<8x108xf32>
    %139 = arith.subf %138, %30 : vector<8x108xf32>
    %140 = vector.broadcast %130 : vector<8x1xf32> to vector<8x108xf32>
    %141 = arith.subf %140, %25 : vector<8x108xf32>
    %cst_42 = arith.constant 1.000000e+00 : f32
    %142 = vector.broadcast %cst_42 : f32 to vector<8x108xf32>
    %143 = arith.mulf %142, %141 : vector<8x108xf32>
    %cst_43 = arith.constant 1.000000e-03 : f32
    %144 = vector.broadcast %cst_43 : f32 to vector<8x108xf32>
    %145 = arith.cmpf oge, %139, %144 : vector<8x108xf32>
    %cst_44 = arith.constant -1.000000e-03 : f32
    %146 = vector.broadcast %cst_44 : f32 to vector<8x108xf32>
    %147 = arith.cmpf ole, %139, %146 : vector<8x108xf32>
    %cst_45 = arith.constant 1.000000e+00 : f32
    %cst_46 = arith.constant 5.000000e-01 : f32
    %148 = vector.broadcast %cst_45 : f32 to vector<8x108xf32>
    %149 = vector.broadcast %cst_46 : f32 to vector<8x108xf32>
    %150 = arith.select %147, %148, %149 : vector<8x108xi1>, vector<8x108xf32>
    %cst_47 = arith.constant 0.000000e+00 : f32
    %151 = vector.broadcast %cst_47 : f32 to vector<8x108xf32>
    %152 = arith.select %145, %151, %150 : vector<8x108xi1>, vector<8x108xf32>
    %cst_48 = arith.constant 0.000000e+00 : f32
    %153 = vector.broadcast %cst_48 : f32 to vector<8x108xf32>
    %154 = arith.subf %153, %143 : vector<8x108xf32>
    %155 = math.exp %154 : vector<8x108xf32>
    %cst_49 = arith.constant 1.000000e+00 : f32
    %156 = vector.broadcast %cst_49 : f32 to vector<8x108xf32>
    %157 = arith.addf %156, %155 : vector<8x108xf32>
    %158 = math.log %157 : vector<8x108xf32>
    %159 = arith.addf %129, %158 : vector<8x108xf32>
    %160 = arith.mulf %152, %143 : vector<8x108xf32>
    %161 = arith.addf %159, %160 : vector<8x108xf32>
    %162 = vector.extract_strided_slice %15 {offsets = [0, 15], sizes = [8, 1], strides = [1, 1]} : vector<8x20xf32> to vector<8x1xf32>
    %163 = vector.extract_strided_slice %20 {offsets = [0, 15], sizes = [8, 1], strides = [1, 1]} : vector<8x20xf32> to vector<8x1xf32>
    %164 = math.exp %162 : vector<8x1xf32>
    %165 = arith.addf %133, %164 : vector<8x1xf32>
    %cst_50 = arith.constant 1.000000e-10 : f32
    %166 = vector.broadcast %cst_50 : f32 to vector<8x1xf32>
    %167 = arith.addf %165, %166 : vector<8x1xf32>
    %168 = math.log %167 : vector<8x1xf32>
    %169 = arith.addf %137, %168 : vector<8x1xf32>
    %170 = vector.broadcast %163 : vector<8x1xf32> to vector<8x108xf32>
    %171 = arith.subf %170, %30 : vector<8x108xf32>
    %172 = vector.broadcast %162 : vector<8x1xf32> to vector<8x108xf32>
    %173 = arith.subf %172, %25 : vector<8x108xf32>
    %cst_51 = arith.constant 1.000000e+00 : f32
    %174 = vector.broadcast %cst_51 : f32 to vector<8x108xf32>
    %175 = arith.mulf %174, %173 : vector<8x108xf32>
    %cst_52 = arith.constant 1.000000e-03 : f32
    %176 = vector.broadcast %cst_52 : f32 to vector<8x108xf32>
    %177 = arith.cmpf oge, %171, %176 : vector<8x108xf32>
    %cst_53 = arith.constant -1.000000e-03 : f32
    %178 = vector.broadcast %cst_53 : f32 to vector<8x108xf32>
    %179 = arith.cmpf ole, %171, %178 : vector<8x108xf32>
    %cst_54 = arith.constant 1.000000e+00 : f32
    %cst_55 = arith.constant 5.000000e-01 : f32
    %180 = vector.broadcast %cst_54 : f32 to vector<8x108xf32>
    %181 = vector.broadcast %cst_55 : f32 to vector<8x108xf32>
    %182 = arith.select %179, %180, %181 : vector<8x108xi1>, vector<8x108xf32>
    %cst_56 = arith.constant 0.000000e+00 : f32
    %183 = vector.broadcast %cst_56 : f32 to vector<8x108xf32>
    %184 = arith.select %177, %183, %182 : vector<8x108xi1>, vector<8x108xf32>
    %cst_57 = arith.constant 0.000000e+00 : f32
    %185 = vector.broadcast %cst_57 : f32 to vector<8x108xf32>
    %186 = arith.subf %185, %175 : vector<8x108xf32>
    %187 = math.exp %186 : vector<8x108xf32>
    %cst_58 = arith.constant 1.000000e+00 : f32
    %188 = vector.broadcast %cst_58 : f32 to vector<8x108xf32>
    %189 = arith.addf %188, %187 : vector<8x108xf32>
    %190 = math.log %189 : vector<8x108xf32>
    %191 = arith.addf %161, %190 : vector<8x108xf32>
    %192 = arith.mulf %184, %175 : vector<8x108xf32>
    %193 = arith.addf %191, %192 : vector<8x108xf32>
    %194 = vector.extract_strided_slice %15 {offsets = [0, 14], sizes = [8, 1], strides = [1, 1]} : vector<8x20xf32> to vector<8x1xf32>
    %195 = vector.extract_strided_slice %20 {offsets = [0, 14], sizes = [8, 1], strides = [1, 1]} : vector<8x20xf32> to vector<8x1xf32>
    %196 = math.exp %194 : vector<8x1xf32>
    %197 = arith.addf %165, %196 : vector<8x1xf32>
    %cst_59 = arith.constant 1.000000e-10 : f32
    %198 = vector.broadcast %cst_59 : f32 to vector<8x1xf32>
    %199 = arith.addf %197, %198 : vector<8x1xf32>
    %200 = math.log %199 : vector<8x1xf32>
    %201 = arith.addf %169, %200 : vector<8x1xf32>
    %202 = vector.broadcast %195 : vector<8x1xf32> to vector<8x108xf32>
    %203 = arith.subf %202, %30 : vector<8x108xf32>
    %204 = vector.broadcast %194 : vector<8x1xf32> to vector<8x108xf32>
    %205 = arith.subf %204, %25 : vector<8x108xf32>
    %cst_60 = arith.constant 1.000000e+00 : f32
    %206 = vector.broadcast %cst_60 : f32 to vector<8x108xf32>
    %207 = arith.mulf %206, %205 : vector<8x108xf32>
    %cst_61 = arith.constant 1.000000e-03 : f32
    %208 = vector.broadcast %cst_61 : f32 to vector<8x108xf32>
    %209 = arith.cmpf oge, %203, %208 : vector<8x108xf32>
    %cst_62 = arith.constant -1.000000e-03 : f32
    %210 = vector.broadcast %cst_62 : f32 to vector<8x108xf32>
    %211 = arith.cmpf ole, %203, %210 : vector<8x108xf32>
    %cst_63 = arith.constant 1.000000e+00 : f32
    %cst_64 = arith.constant 5.000000e-01 : f32
    %212 = vector.broadcast %cst_63 : f32 to vector<8x108xf32>
    %213 = vector.broadcast %cst_64 : f32 to vector<8x108xf32>
    %214 = arith.select %211, %212, %213 : vector<8x108xi1>, vector<8x108xf32>
    %cst_65 = arith.constant 0.000000e+00 : f32
    %215 = vector.broadcast %cst_65 : f32 to vector<8x108xf32>
    %216 = arith.select %209, %215, %214 : vector<8x108xi1>, vector<8x108xf32>
    %cst_66 = arith.constant 0.000000e+00 : f32
    %217 = vector.broadcast %cst_66 : f32 to vector<8x108xf32>
    %218 = arith.subf %217, %207 : vector<8x108xf32>
    %219 = math.exp %218 : vector<8x108xf32>
    %cst_67 = arith.constant 1.000000e+00 : f32
    %220 = vector.broadcast %cst_67 : f32 to vector<8x108xf32>
    %221 = arith.addf %220, %219 : vector<8x108xf32>
    %222 = math.log %221 : vector<8x108xf32>
    %223 = arith.addf %193, %222 : vector<8x108xf32>
    %224 = arith.mulf %216, %207 : vector<8x108xf32>
    %225 = arith.addf %223, %224 : vector<8x108xf32>
    %226 = vector.extract_strided_slice %15 {offsets = [0, 13], sizes = [8, 1], strides = [1, 1]} : vector<8x20xf32> to vector<8x1xf32>
    %227 = vector.extract_strided_slice %20 {offsets = [0, 13], sizes = [8, 1], strides = [1, 1]} : vector<8x20xf32> to vector<8x1xf32>
    %228 = math.exp %226 : vector<8x1xf32>
    %229 = arith.addf %197, %228 : vector<8x1xf32>
    %cst_68 = arith.constant 1.000000e-10 : f32
    %230 = vector.broadcast %cst_68 : f32 to vector<8x1xf32>
    %231 = arith.addf %229, %230 : vector<8x1xf32>
    %232 = math.log %231 : vector<8x1xf32>
    %233 = arith.addf %201, %232 : vector<8x1xf32>
    %234 = vector.broadcast %227 : vector<8x1xf32> to vector<8x108xf32>
    %235 = arith.subf %234, %30 : vector<8x108xf32>
    %236 = vector.broadcast %226 : vector<8x1xf32> to vector<8x108xf32>
    %237 = arith.subf %236, %25 : vector<8x108xf32>
    %cst_69 = arith.constant 1.000000e+00 : f32
    %238 = vector.broadcast %cst_69 : f32 to vector<8x108xf32>
    %239 = arith.mulf %238, %237 : vector<8x108xf32>
    %cst_70 = arith.constant 1.000000e-03 : f32
    %240 = vector.broadcast %cst_70 : f32 to vector<8x108xf32>
    %241 = arith.cmpf oge, %235, %240 : vector<8x108xf32>
    %cst_71 = arith.constant -1.000000e-03 : f32
    %242 = vector.broadcast %cst_71 : f32 to vector<8x108xf32>
    %243 = arith.cmpf ole, %235, %242 : vector<8x108xf32>
    %cst_72 = arith.constant 1.000000e+00 : f32
    %cst_73 = arith.constant 5.000000e-01 : f32
    %244 = vector.broadcast %cst_72 : f32 to vector<8x108xf32>
    %245 = vector.broadcast %cst_73 : f32 to vector<8x108xf32>
    %246 = arith.select %243, %244, %245 : vector<8x108xi1>, vector<8x108xf32>
    %cst_74 = arith.constant 0.000000e+00 : f32
    %247 = vector.broadcast %cst_74 : f32 to vector<8x108xf32>
    %248 = arith.select %241, %247, %246 : vector<8x108xi1>, vector<8x108xf32>
    %cst_75 = arith.constant 0.000000e+00 : f32
    %249 = vector.broadcast %cst_75 : f32 to vector<8x108xf32>
    %250 = arith.subf %249, %239 : vector<8x108xf32>
    %251 = math.exp %250 : vector<8x108xf32>
    %cst_76 = arith.constant 1.000000e+00 : f32
    %252 = vector.broadcast %cst_76 : f32 to vector<8x108xf32>
    %253 = arith.addf %252, %251 : vector<8x108xf32>
    %254 = math.log %253 : vector<8x108xf32>
    %255 = arith.addf %225, %254 : vector<8x108xf32>
    %256 = arith.mulf %248, %239 : vector<8x108xf32>
    %257 = arith.addf %255, %256 : vector<8x108xf32>
    %258 = vector.extract_strided_slice %15 {offsets = [0, 12], sizes = [8, 1], strides = [1, 1]} : vector<8x20xf32> to vector<8x1xf32>
    %259 = vector.extract_strided_slice %20 {offsets = [0, 12], sizes = [8, 1], strides = [1, 1]} : vector<8x20xf32> to vector<8x1xf32>
    %260 = math.exp %258 : vector<8x1xf32>
    %261 = arith.addf %229, %260 : vector<8x1xf32>
    %cst_77 = arith.constant 1.000000e-10 : f32
    %262 = vector.broadcast %cst_77 : f32 to vector<8x1xf32>
    %263 = arith.addf %261, %262 : vector<8x1xf32>
    %264 = math.log %263 : vector<8x1xf32>
    %265 = arith.addf %233, %264 : vector<8x1xf32>
    %266 = vector.broadcast %259 : vector<8x1xf32> to vector<8x108xf32>
    %267 = arith.subf %266, %30 : vector<8x108xf32>
    %268 = vector.broadcast %258 : vector<8x1xf32> to vector<8x108xf32>
    %269 = arith.subf %268, %25 : vector<8x108xf32>
    %cst_78 = arith.constant 1.000000e+00 : f32
    %270 = vector.broadcast %cst_78 : f32 to vector<8x108xf32>
    %271 = arith.mulf %270, %269 : vector<8x108xf32>
    %cst_79 = arith.constant 1.000000e-03 : f32
    %272 = vector.broadcast %cst_79 : f32 to vector<8x108xf32>
    %273 = arith.cmpf oge, %267, %272 : vector<8x108xf32>
    %cst_80 = arith.constant -1.000000e-03 : f32
    %274 = vector.broadcast %cst_80 : f32 to vector<8x108xf32>
    %275 = arith.cmpf ole, %267, %274 : vector<8x108xf32>
    %cst_81 = arith.constant 1.000000e+00 : f32
    %cst_82 = arith.constant 5.000000e-01 : f32
    %276 = vector.broadcast %cst_81 : f32 to vector<8x108xf32>
    %277 = vector.broadcast %cst_82 : f32 to vector<8x108xf32>
    %278 = arith.select %275, %276, %277 : vector<8x108xi1>, vector<8x108xf32>
    %cst_83 = arith.constant 0.000000e+00 : f32
    %279 = vector.broadcast %cst_83 : f32 to vector<8x108xf32>
    %280 = arith.select %273, %279, %278 : vector<8x108xi1>, vector<8x108xf32>
    %cst_84 = arith.constant 0.000000e+00 : f32
    %281 = vector.broadcast %cst_84 : f32 to vector<8x108xf32>
    %282 = arith.subf %281, %271 : vector<8x108xf32>
    %283 = math.exp %282 : vector<8x108xf32>
    %cst_85 = arith.constant 1.000000e+00 : f32
    %284 = vector.broadcast %cst_85 : f32 to vector<8x108xf32>
    %285 = arith.addf %284, %283 : vector<8x108xf32>
    %286 = math.log %285 : vector<8x108xf32>
    %287 = arith.addf %257, %286 : vector<8x108xf32>
    %288 = arith.mulf %280, %271 : vector<8x108xf32>
    %289 = arith.addf %287, %288 : vector<8x108xf32>
    %290 = vector.extract_strided_slice %15 {offsets = [0, 11], sizes = [8, 1], strides = [1, 1]} : vector<8x20xf32> to vector<8x1xf32>
    %291 = vector.extract_strided_slice %20 {offsets = [0, 11], sizes = [8, 1], strides = [1, 1]} : vector<8x20xf32> to vector<8x1xf32>
    %292 = math.exp %290 : vector<8x1xf32>
    %293 = arith.addf %261, %292 : vector<8x1xf32>
    %cst_86 = arith.constant 1.000000e-10 : f32
    %294 = vector.broadcast %cst_86 : f32 to vector<8x1xf32>
    %295 = arith.addf %293, %294 : vector<8x1xf32>
    %296 = math.log %295 : vector<8x1xf32>
    %297 = arith.addf %265, %296 : vector<8x1xf32>
    %298 = vector.broadcast %291 : vector<8x1xf32> to vector<8x108xf32>
    %299 = arith.subf %298, %30 : vector<8x108xf32>
    %300 = vector.broadcast %290 : vector<8x1xf32> to vector<8x108xf32>
    %301 = arith.subf %300, %25 : vector<8x108xf32>
    %cst_87 = arith.constant 1.000000e+00 : f32
    %302 = vector.broadcast %cst_87 : f32 to vector<8x108xf32>
    %303 = arith.mulf %302, %301 : vector<8x108xf32>
    %cst_88 = arith.constant 1.000000e-03 : f32
    %304 = vector.broadcast %cst_88 : f32 to vector<8x108xf32>
    %305 = arith.cmpf oge, %299, %304 : vector<8x108xf32>
    %cst_89 = arith.constant -1.000000e-03 : f32
    %306 = vector.broadcast %cst_89 : f32 to vector<8x108xf32>
    %307 = arith.cmpf ole, %299, %306 : vector<8x108xf32>
    %cst_90 = arith.constant 1.000000e+00 : f32
    %cst_91 = arith.constant 5.000000e-01 : f32
    %308 = vector.broadcast %cst_90 : f32 to vector<8x108xf32>
    %309 = vector.broadcast %cst_91 : f32 to vector<8x108xf32>
    %310 = arith.select %307, %308, %309 : vector<8x108xi1>, vector<8x108xf32>
    %cst_92 = arith.constant 0.000000e+00 : f32
    %311 = vector.broadcast %cst_92 : f32 to vector<8x108xf32>
    %312 = arith.select %305, %311, %310 : vector<8x108xi1>, vector<8x108xf32>
    %cst_93 = arith.constant 0.000000e+00 : f32
    %313 = vector.broadcast %cst_93 : f32 to vector<8x108xf32>
    %314 = arith.subf %313, %303 : vector<8x108xf32>
    %315 = math.exp %314 : vector<8x108xf32>
    %cst_94 = arith.constant 1.000000e+00 : f32
    %316 = vector.broadcast %cst_94 : f32 to vector<8x108xf32>
    %317 = arith.addf %316, %315 : vector<8x108xf32>
    %318 = math.log %317 : vector<8x108xf32>
    %319 = arith.addf %289, %318 : vector<8x108xf32>
    %320 = arith.mulf %312, %303 : vector<8x108xf32>
    %321 = arith.addf %319, %320 : vector<8x108xf32>
    %322 = vector.extract_strided_slice %15 {offsets = [0, 10], sizes = [8, 1], strides = [1, 1]} : vector<8x20xf32> to vector<8x1xf32>
    %323 = vector.extract_strided_slice %20 {offsets = [0, 10], sizes = [8, 1], strides = [1, 1]} : vector<8x20xf32> to vector<8x1xf32>
    %324 = math.exp %322 : vector<8x1xf32>
    %325 = arith.addf %293, %324 : vector<8x1xf32>
    %cst_95 = arith.constant 1.000000e-10 : f32
    %326 = vector.broadcast %cst_95 : f32 to vector<8x1xf32>
    %327 = arith.addf %325, %326 : vector<8x1xf32>
    %328 = math.log %327 : vector<8x1xf32>
    %329 = arith.addf %297, %328 : vector<8x1xf32>
    %330 = vector.broadcast %323 : vector<8x1xf32> to vector<8x108xf32>
    %331 = arith.subf %330, %30 : vector<8x108xf32>
    %332 = vector.broadcast %322 : vector<8x1xf32> to vector<8x108xf32>
    %333 = arith.subf %332, %25 : vector<8x108xf32>
    %cst_96 = arith.constant 1.000000e+00 : f32
    %334 = vector.broadcast %cst_96 : f32 to vector<8x108xf32>
    %335 = arith.mulf %334, %333 : vector<8x108xf32>
    %cst_97 = arith.constant 1.000000e-03 : f32
    %336 = vector.broadcast %cst_97 : f32 to vector<8x108xf32>
    %337 = arith.cmpf oge, %331, %336 : vector<8x108xf32>
    %cst_98 = arith.constant -1.000000e-03 : f32
    %338 = vector.broadcast %cst_98 : f32 to vector<8x108xf32>
    %339 = arith.cmpf ole, %331, %338 : vector<8x108xf32>
    %cst_99 = arith.constant 1.000000e+00 : f32
    %cst_100 = arith.constant 5.000000e-01 : f32
    %340 = vector.broadcast %cst_99 : f32 to vector<8x108xf32>
    %341 = vector.broadcast %cst_100 : f32 to vector<8x108xf32>
    %342 = arith.select %339, %340, %341 : vector<8x108xi1>, vector<8x108xf32>
    %cst_101 = arith.constant 0.000000e+00 : f32
    %343 = vector.broadcast %cst_101 : f32 to vector<8x108xf32>
    %344 = arith.select %337, %343, %342 : vector<8x108xi1>, vector<8x108xf32>
    %cst_102 = arith.constant 0.000000e+00 : f32
    %345 = vector.broadcast %cst_102 : f32 to vector<8x108xf32>
    %346 = arith.subf %345, %335 : vector<8x108xf32>
    %347 = math.exp %346 : vector<8x108xf32>
    %cst_103 = arith.constant 1.000000e+00 : f32
    %348 = vector.broadcast %cst_103 : f32 to vector<8x108xf32>
    %349 = arith.addf %348, %347 : vector<8x108xf32>
    %350 = math.log %349 : vector<8x108xf32>
    %351 = arith.addf %321, %350 : vector<8x108xf32>
    %352 = arith.mulf %344, %335 : vector<8x108xf32>
    %353 = arith.addf %351, %352 : vector<8x108xf32>
    %354 = vector.extract_strided_slice %15 {offsets = [0, 9], sizes = [8, 1], strides = [1, 1]} : vector<8x20xf32> to vector<8x1xf32>
    %355 = vector.extract_strided_slice %20 {offsets = [0, 9], sizes = [8, 1], strides = [1, 1]} : vector<8x20xf32> to vector<8x1xf32>
    %356 = math.exp %354 : vector<8x1xf32>
    %357 = arith.addf %325, %356 : vector<8x1xf32>
    %cst_104 = arith.constant 1.000000e-10 : f32
    %358 = vector.broadcast %cst_104 : f32 to vector<8x1xf32>
    %359 = arith.addf %357, %358 : vector<8x1xf32>
    %360 = math.log %359 : vector<8x1xf32>
    %361 = arith.addf %329, %360 : vector<8x1xf32>
    %362 = vector.broadcast %355 : vector<8x1xf32> to vector<8x108xf32>
    %363 = arith.subf %362, %30 : vector<8x108xf32>
    %364 = vector.broadcast %354 : vector<8x1xf32> to vector<8x108xf32>
    %365 = arith.subf %364, %25 : vector<8x108xf32>
    %cst_105 = arith.constant 1.000000e+00 : f32
    %366 = vector.broadcast %cst_105 : f32 to vector<8x108xf32>
    %367 = arith.mulf %366, %365 : vector<8x108xf32>
    %cst_106 = arith.constant 1.000000e-03 : f32
    %368 = vector.broadcast %cst_106 : f32 to vector<8x108xf32>
    %369 = arith.cmpf oge, %363, %368 : vector<8x108xf32>
    %cst_107 = arith.constant -1.000000e-03 : f32
    %370 = vector.broadcast %cst_107 : f32 to vector<8x108xf32>
    %371 = arith.cmpf ole, %363, %370 : vector<8x108xf32>
    %cst_108 = arith.constant 1.000000e+00 : f32
    %cst_109 = arith.constant 5.000000e-01 : f32
    %372 = vector.broadcast %cst_108 : f32 to vector<8x108xf32>
    %373 = vector.broadcast %cst_109 : f32 to vector<8x108xf32>
    %374 = arith.select %371, %372, %373 : vector<8x108xi1>, vector<8x108xf32>
    %cst_110 = arith.constant 0.000000e+00 : f32
    %375 = vector.broadcast %cst_110 : f32 to vector<8x108xf32>
    %376 = arith.select %369, %375, %374 : vector<8x108xi1>, vector<8x108xf32>
    %cst_111 = arith.constant 0.000000e+00 : f32
    %377 = vector.broadcast %cst_111 : f32 to vector<8x108xf32>
    %378 = arith.subf %377, %367 : vector<8x108xf32>
    %379 = math.exp %378 : vector<8x108xf32>
    %cst_112 = arith.constant 1.000000e+00 : f32
    %380 = vector.broadcast %cst_112 : f32 to vector<8x108xf32>
    %381 = arith.addf %380, %379 : vector<8x108xf32>
    %382 = math.log %381 : vector<8x108xf32>
    %383 = arith.addf %353, %382 : vector<8x108xf32>
    %384 = arith.mulf %376, %367 : vector<8x108xf32>
    %385 = arith.addf %383, %384 : vector<8x108xf32>
    %386 = vector.extract_strided_slice %15 {offsets = [0, 8], sizes = [8, 1], strides = [1, 1]} : vector<8x20xf32> to vector<8x1xf32>
    %387 = vector.extract_strided_slice %20 {offsets = [0, 8], sizes = [8, 1], strides = [1, 1]} : vector<8x20xf32> to vector<8x1xf32>
    %388 = math.exp %386 : vector<8x1xf32>
    %389 = arith.addf %357, %388 : vector<8x1xf32>
    %cst_113 = arith.constant 1.000000e-10 : f32
    %390 = vector.broadcast %cst_113 : f32 to vector<8x1xf32>
    %391 = arith.addf %389, %390 : vector<8x1xf32>
    %392 = math.log %391 : vector<8x1xf32>
    %393 = arith.addf %361, %392 : vector<8x1xf32>
    %394 = vector.broadcast %387 : vector<8x1xf32> to vector<8x108xf32>
    %395 = arith.subf %394, %30 : vector<8x108xf32>
    %396 = vector.broadcast %386 : vector<8x1xf32> to vector<8x108xf32>
    %397 = arith.subf %396, %25 : vector<8x108xf32>
    %cst_114 = arith.constant 1.000000e+00 : f32
    %398 = vector.broadcast %cst_114 : f32 to vector<8x108xf32>
    %399 = arith.mulf %398, %397 : vector<8x108xf32>
    %cst_115 = arith.constant 1.000000e-03 : f32
    %400 = vector.broadcast %cst_115 : f32 to vector<8x108xf32>
    %401 = arith.cmpf oge, %395, %400 : vector<8x108xf32>
    %cst_116 = arith.constant -1.000000e-03 : f32
    %402 = vector.broadcast %cst_116 : f32 to vector<8x108xf32>
    %403 = arith.cmpf ole, %395, %402 : vector<8x108xf32>
    %cst_117 = arith.constant 1.000000e+00 : f32
    %cst_118 = arith.constant 5.000000e-01 : f32
    %404 = vector.broadcast %cst_117 : f32 to vector<8x108xf32>
    %405 = vector.broadcast %cst_118 : f32 to vector<8x108xf32>
    %406 = arith.select %403, %404, %405 : vector<8x108xi1>, vector<8x108xf32>
    %cst_119 = arith.constant 0.000000e+00 : f32
    %407 = vector.broadcast %cst_119 : f32 to vector<8x108xf32>
    %408 = arith.select %401, %407, %406 : vector<8x108xi1>, vector<8x108xf32>
    %cst_120 = arith.constant 0.000000e+00 : f32
    %409 = vector.broadcast %cst_120 : f32 to vector<8x108xf32>
    %410 = arith.subf %409, %399 : vector<8x108xf32>
    %411 = math.exp %410 : vector<8x108xf32>
    %cst_121 = arith.constant 1.000000e+00 : f32
    %412 = vector.broadcast %cst_121 : f32 to vector<8x108xf32>
    %413 = arith.addf %412, %411 : vector<8x108xf32>
    %414 = math.log %413 : vector<8x108xf32>
    %415 = arith.addf %385, %414 : vector<8x108xf32>
    %416 = arith.mulf %408, %399 : vector<8x108xf32>
    %417 = arith.addf %415, %416 : vector<8x108xf32>
    %418 = vector.extract_strided_slice %15 {offsets = [0, 7], sizes = [8, 1], strides = [1, 1]} : vector<8x20xf32> to vector<8x1xf32>
    %419 = vector.extract_strided_slice %20 {offsets = [0, 7], sizes = [8, 1], strides = [1, 1]} : vector<8x20xf32> to vector<8x1xf32>
    %420 = math.exp %418 : vector<8x1xf32>
    %421 = arith.addf %389, %420 : vector<8x1xf32>
    %cst_122 = arith.constant 1.000000e-10 : f32
    %422 = vector.broadcast %cst_122 : f32 to vector<8x1xf32>
    %423 = arith.addf %421, %422 : vector<8x1xf32>
    %424 = math.log %423 : vector<8x1xf32>
    %425 = arith.addf %393, %424 : vector<8x1xf32>
    %426 = vector.broadcast %419 : vector<8x1xf32> to vector<8x108xf32>
    %427 = arith.subf %426, %30 : vector<8x108xf32>
    %428 = vector.broadcast %418 : vector<8x1xf32> to vector<8x108xf32>
    %429 = arith.subf %428, %25 : vector<8x108xf32>
    %cst_123 = arith.constant 1.000000e+00 : f32
    %430 = vector.broadcast %cst_123 : f32 to vector<8x108xf32>
    %431 = arith.mulf %430, %429 : vector<8x108xf32>
    %cst_124 = arith.constant 1.000000e-03 : f32
    %432 = vector.broadcast %cst_124 : f32 to vector<8x108xf32>
    %433 = arith.cmpf oge, %427, %432 : vector<8x108xf32>
    %cst_125 = arith.constant -1.000000e-03 : f32
    %434 = vector.broadcast %cst_125 : f32 to vector<8x108xf32>
    %435 = arith.cmpf ole, %427, %434 : vector<8x108xf32>
    %cst_126 = arith.constant 1.000000e+00 : f32
    %cst_127 = arith.constant 5.000000e-01 : f32
    %436 = vector.broadcast %cst_126 : f32 to vector<8x108xf32>
    %437 = vector.broadcast %cst_127 : f32 to vector<8x108xf32>
    %438 = arith.select %435, %436, %437 : vector<8x108xi1>, vector<8x108xf32>
    %cst_128 = arith.constant 0.000000e+00 : f32
    %439 = vector.broadcast %cst_128 : f32 to vector<8x108xf32>
    %440 = arith.select %433, %439, %438 : vector<8x108xi1>, vector<8x108xf32>
    %cst_129 = arith.constant 0.000000e+00 : f32
    %441 = vector.broadcast %cst_129 : f32 to vector<8x108xf32>
    %442 = arith.subf %441, %431 : vector<8x108xf32>
    %443 = math.exp %442 : vector<8x108xf32>
    %cst_130 = arith.constant 1.000000e+00 : f32
    %444 = vector.broadcast %cst_130 : f32 to vector<8x108xf32>
    %445 = arith.addf %444, %443 : vector<8x108xf32>
    %446 = math.log %445 : vector<8x108xf32>
    %447 = arith.addf %417, %446 : vector<8x108xf32>
    %448 = arith.mulf %440, %431 : vector<8x108xf32>
    %449 = arith.addf %447, %448 : vector<8x108xf32>
    %450 = vector.extract_strided_slice %15 {offsets = [0, 6], sizes = [8, 1], strides = [1, 1]} : vector<8x20xf32> to vector<8x1xf32>
    %451 = vector.extract_strided_slice %20 {offsets = [0, 6], sizes = [8, 1], strides = [1, 1]} : vector<8x20xf32> to vector<8x1xf32>
    %452 = math.exp %450 : vector<8x1xf32>
    %453 = arith.addf %421, %452 : vector<8x1xf32>
    %cst_131 = arith.constant 1.000000e-10 : f32
    %454 = vector.broadcast %cst_131 : f32 to vector<8x1xf32>
    %455 = arith.addf %453, %454 : vector<8x1xf32>
    %456 = math.log %455 : vector<8x1xf32>
    %457 = arith.addf %425, %456 : vector<8x1xf32>
    %458 = vector.broadcast %451 : vector<8x1xf32> to vector<8x108xf32>
    %459 = arith.subf %458, %30 : vector<8x108xf32>
    %460 = vector.broadcast %450 : vector<8x1xf32> to vector<8x108xf32>
    %461 = arith.subf %460, %25 : vector<8x108xf32>
    %cst_132 = arith.constant 1.000000e+00 : f32
    %462 = vector.broadcast %cst_132 : f32 to vector<8x108xf32>
    %463 = arith.mulf %462, %461 : vector<8x108xf32>
    %cst_133 = arith.constant 1.000000e-03 : f32
    %464 = vector.broadcast %cst_133 : f32 to vector<8x108xf32>
    %465 = arith.cmpf oge, %459, %464 : vector<8x108xf32>
    %cst_134 = arith.constant -1.000000e-03 : f32
    %466 = vector.broadcast %cst_134 : f32 to vector<8x108xf32>
    %467 = arith.cmpf ole, %459, %466 : vector<8x108xf32>
    %cst_135 = arith.constant 1.000000e+00 : f32
    %cst_136 = arith.constant 5.000000e-01 : f32
    %468 = vector.broadcast %cst_135 : f32 to vector<8x108xf32>
    %469 = vector.broadcast %cst_136 : f32 to vector<8x108xf32>
    %470 = arith.select %467, %468, %469 : vector<8x108xi1>, vector<8x108xf32>
    %cst_137 = arith.constant 0.000000e+00 : f32
    %471 = vector.broadcast %cst_137 : f32 to vector<8x108xf32>
    %472 = arith.select %465, %471, %470 : vector<8x108xi1>, vector<8x108xf32>
    %cst_138 = arith.constant 0.000000e+00 : f32
    %473 = vector.broadcast %cst_138 : f32 to vector<8x108xf32>
    %474 = arith.subf %473, %463 : vector<8x108xf32>
    %475 = math.exp %474 : vector<8x108xf32>
    %cst_139 = arith.constant 1.000000e+00 : f32
    %476 = vector.broadcast %cst_139 : f32 to vector<8x108xf32>
    %477 = arith.addf %476, %475 : vector<8x108xf32>
    %478 = math.log %477 : vector<8x108xf32>
    %479 = arith.addf %449, %478 : vector<8x108xf32>
    %480 = arith.mulf %472, %463 : vector<8x108xf32>
    %481 = arith.addf %479, %480 : vector<8x108xf32>
    %482 = vector.extract_strided_slice %15 {offsets = [0, 5], sizes = [8, 1], strides = [1, 1]} : vector<8x20xf32> to vector<8x1xf32>
    %483 = vector.extract_strided_slice %20 {offsets = [0, 5], sizes = [8, 1], strides = [1, 1]} : vector<8x20xf32> to vector<8x1xf32>
    %484 = math.exp %482 : vector<8x1xf32>
    %485 = arith.addf %453, %484 : vector<8x1xf32>
    %cst_140 = arith.constant 1.000000e-10 : f32
    %486 = vector.broadcast %cst_140 : f32 to vector<8x1xf32>
    %487 = arith.addf %485, %486 : vector<8x1xf32>
    %488 = math.log %487 : vector<8x1xf32>
    %489 = arith.addf %457, %488 : vector<8x1xf32>
    %490 = vector.broadcast %483 : vector<8x1xf32> to vector<8x108xf32>
    %491 = arith.subf %490, %30 : vector<8x108xf32>
    %492 = vector.broadcast %482 : vector<8x1xf32> to vector<8x108xf32>
    %493 = arith.subf %492, %25 : vector<8x108xf32>
    %cst_141 = arith.constant 1.000000e+00 : f32
    %494 = vector.broadcast %cst_141 : f32 to vector<8x108xf32>
    %495 = arith.mulf %494, %493 : vector<8x108xf32>
    %cst_142 = arith.constant 1.000000e-03 : f32
    %496 = vector.broadcast %cst_142 : f32 to vector<8x108xf32>
    %497 = arith.cmpf oge, %491, %496 : vector<8x108xf32>
    %cst_143 = arith.constant -1.000000e-03 : f32
    %498 = vector.broadcast %cst_143 : f32 to vector<8x108xf32>
    %499 = arith.cmpf ole, %491, %498 : vector<8x108xf32>
    %cst_144 = arith.constant 1.000000e+00 : f32
    %cst_145 = arith.constant 5.000000e-01 : f32
    %500 = vector.broadcast %cst_144 : f32 to vector<8x108xf32>
    %501 = vector.broadcast %cst_145 : f32 to vector<8x108xf32>
    %502 = arith.select %499, %500, %501 : vector<8x108xi1>, vector<8x108xf32>
    %cst_146 = arith.constant 0.000000e+00 : f32
    %503 = vector.broadcast %cst_146 : f32 to vector<8x108xf32>
    %504 = arith.select %497, %503, %502 : vector<8x108xi1>, vector<8x108xf32>
    %cst_147 = arith.constant 0.000000e+00 : f32
    %505 = vector.broadcast %cst_147 : f32 to vector<8x108xf32>
    %506 = arith.subf %505, %495 : vector<8x108xf32>
    %507 = math.exp %506 : vector<8x108xf32>
    %cst_148 = arith.constant 1.000000e+00 : f32
    %508 = vector.broadcast %cst_148 : f32 to vector<8x108xf32>
    %509 = arith.addf %508, %507 : vector<8x108xf32>
    %510 = math.log %509 : vector<8x108xf32>
    %511 = arith.addf %481, %510 : vector<8x108xf32>
    %512 = arith.mulf %504, %495 : vector<8x108xf32>
    %513 = arith.addf %511, %512 : vector<8x108xf32>
    %514 = vector.extract_strided_slice %15 {offsets = [0, 4], sizes = [8, 1], strides = [1, 1]} : vector<8x20xf32> to vector<8x1xf32>
    %515 = vector.extract_strided_slice %20 {offsets = [0, 4], sizes = [8, 1], strides = [1, 1]} : vector<8x20xf32> to vector<8x1xf32>
    %516 = math.exp %514 : vector<8x1xf32>
    %517 = arith.addf %485, %516 : vector<8x1xf32>
    %cst_149 = arith.constant 1.000000e-10 : f32
    %518 = vector.broadcast %cst_149 : f32 to vector<8x1xf32>
    %519 = arith.addf %517, %518 : vector<8x1xf32>
    %520 = math.log %519 : vector<8x1xf32>
    %521 = arith.addf %489, %520 : vector<8x1xf32>
    %522 = vector.broadcast %515 : vector<8x1xf32> to vector<8x108xf32>
    %523 = arith.subf %522, %30 : vector<8x108xf32>
    %524 = vector.broadcast %514 : vector<8x1xf32> to vector<8x108xf32>
    %525 = arith.subf %524, %25 : vector<8x108xf32>
    %cst_150 = arith.constant 1.000000e+00 : f32
    %526 = vector.broadcast %cst_150 : f32 to vector<8x108xf32>
    %527 = arith.mulf %526, %525 : vector<8x108xf32>
    %cst_151 = arith.constant 1.000000e-03 : f32
    %528 = vector.broadcast %cst_151 : f32 to vector<8x108xf32>
    %529 = arith.cmpf oge, %523, %528 : vector<8x108xf32>
    %cst_152 = arith.constant -1.000000e-03 : f32
    %530 = vector.broadcast %cst_152 : f32 to vector<8x108xf32>
    %531 = arith.cmpf ole, %523, %530 : vector<8x108xf32>
    %cst_153 = arith.constant 1.000000e+00 : f32
    %cst_154 = arith.constant 5.000000e-01 : f32
    %532 = vector.broadcast %cst_153 : f32 to vector<8x108xf32>
    %533 = vector.broadcast %cst_154 : f32 to vector<8x108xf32>
    %534 = arith.select %531, %532, %533 : vector<8x108xi1>, vector<8x108xf32>
    %cst_155 = arith.constant 0.000000e+00 : f32
    %535 = vector.broadcast %cst_155 : f32 to vector<8x108xf32>
    %536 = arith.select %529, %535, %534 : vector<8x108xi1>, vector<8x108xf32>
    %cst_156 = arith.constant 0.000000e+00 : f32
    %537 = vector.broadcast %cst_156 : f32 to vector<8x108xf32>
    %538 = arith.subf %537, %527 : vector<8x108xf32>
    %539 = math.exp %538 : vector<8x108xf32>
    %cst_157 = arith.constant 1.000000e+00 : f32
    %540 = vector.broadcast %cst_157 : f32 to vector<8x108xf32>
    %541 = arith.addf %540, %539 : vector<8x108xf32>
    %542 = math.log %541 : vector<8x108xf32>
    %543 = arith.addf %513, %542 : vector<8x108xf32>
    %544 = arith.mulf %536, %527 : vector<8x108xf32>
    %545 = arith.addf %543, %544 : vector<8x108xf32>
    %546 = vector.extract_strided_slice %15 {offsets = [0, 3], sizes = [8, 1], strides = [1, 1]} : vector<8x20xf32> to vector<8x1xf32>
    %547 = vector.extract_strided_slice %20 {offsets = [0, 3], sizes = [8, 1], strides = [1, 1]} : vector<8x20xf32> to vector<8x1xf32>
    %548 = math.exp %546 : vector<8x1xf32>
    %549 = arith.addf %517, %548 : vector<8x1xf32>
    %cst_158 = arith.constant 1.000000e-10 : f32
    %550 = vector.broadcast %cst_158 : f32 to vector<8x1xf32>
    %551 = arith.addf %549, %550 : vector<8x1xf32>
    %552 = math.log %551 : vector<8x1xf32>
    %553 = arith.addf %521, %552 : vector<8x1xf32>
    %554 = vector.broadcast %547 : vector<8x1xf32> to vector<8x108xf32>
    %555 = arith.subf %554, %30 : vector<8x108xf32>
    %556 = vector.broadcast %546 : vector<8x1xf32> to vector<8x108xf32>
    %557 = arith.subf %556, %25 : vector<8x108xf32>
    %cst_159 = arith.constant 1.000000e+00 : f32
    %558 = vector.broadcast %cst_159 : f32 to vector<8x108xf32>
    %559 = arith.mulf %558, %557 : vector<8x108xf32>
    %cst_160 = arith.constant 1.000000e-03 : f32
    %560 = vector.broadcast %cst_160 : f32 to vector<8x108xf32>
    %561 = arith.cmpf oge, %555, %560 : vector<8x108xf32>
    %cst_161 = arith.constant -1.000000e-03 : f32
    %562 = vector.broadcast %cst_161 : f32 to vector<8x108xf32>
    %563 = arith.cmpf ole, %555, %562 : vector<8x108xf32>
    %cst_162 = arith.constant 1.000000e+00 : f32
    %cst_163 = arith.constant 5.000000e-01 : f32
    %564 = vector.broadcast %cst_162 : f32 to vector<8x108xf32>
    %565 = vector.broadcast %cst_163 : f32 to vector<8x108xf32>
    %566 = arith.select %563, %564, %565 : vector<8x108xi1>, vector<8x108xf32>
    %cst_164 = arith.constant 0.000000e+00 : f32
    %567 = vector.broadcast %cst_164 : f32 to vector<8x108xf32>
    %568 = arith.select %561, %567, %566 : vector<8x108xi1>, vector<8x108xf32>
    %cst_165 = arith.constant 0.000000e+00 : f32
    %569 = vector.broadcast %cst_165 : f32 to vector<8x108xf32>
    %570 = arith.subf %569, %559 : vector<8x108xf32>
    %571 = math.exp %570 : vector<8x108xf32>
    %cst_166 = arith.constant 1.000000e+00 : f32
    %572 = vector.broadcast %cst_166 : f32 to vector<8x108xf32>
    %573 = arith.addf %572, %571 : vector<8x108xf32>
    %574 = math.log %573 : vector<8x108xf32>
    %575 = arith.addf %545, %574 : vector<8x108xf32>
    %576 = arith.mulf %568, %559 : vector<8x108xf32>
    %577 = arith.addf %575, %576 : vector<8x108xf32>
    %578 = vector.extract_strided_slice %15 {offsets = [0, 2], sizes = [8, 1], strides = [1, 1]} : vector<8x20xf32> to vector<8x1xf32>
    %579 = vector.extract_strided_slice %20 {offsets = [0, 2], sizes = [8, 1], strides = [1, 1]} : vector<8x20xf32> to vector<8x1xf32>
    %580 = math.exp %578 : vector<8x1xf32>
    %581 = arith.addf %549, %580 : vector<8x1xf32>
    %cst_167 = arith.constant 1.000000e-10 : f32
    %582 = vector.broadcast %cst_167 : f32 to vector<8x1xf32>
    %583 = arith.addf %581, %582 : vector<8x1xf32>
    %584 = math.log %583 : vector<8x1xf32>
    %585 = arith.addf %553, %584 : vector<8x1xf32>
    %586 = vector.broadcast %579 : vector<8x1xf32> to vector<8x108xf32>
    %587 = arith.subf %586, %30 : vector<8x108xf32>
    %588 = vector.broadcast %578 : vector<8x1xf32> to vector<8x108xf32>
    %589 = arith.subf %588, %25 : vector<8x108xf32>
    %cst_168 = arith.constant 1.000000e+00 : f32
    %590 = vector.broadcast %cst_168 : f32 to vector<8x108xf32>
    %591 = arith.mulf %590, %589 : vector<8x108xf32>
    %cst_169 = arith.constant 1.000000e-03 : f32
    %592 = vector.broadcast %cst_169 : f32 to vector<8x108xf32>
    %593 = arith.cmpf oge, %587, %592 : vector<8x108xf32>
    %cst_170 = arith.constant -1.000000e-03 : f32
    %594 = vector.broadcast %cst_170 : f32 to vector<8x108xf32>
    %595 = arith.cmpf ole, %587, %594 : vector<8x108xf32>
    %cst_171 = arith.constant 1.000000e+00 : f32
    %cst_172 = arith.constant 5.000000e-01 : f32
    %596 = vector.broadcast %cst_171 : f32 to vector<8x108xf32>
    %597 = vector.broadcast %cst_172 : f32 to vector<8x108xf32>
    %598 = arith.select %595, %596, %597 : vector<8x108xi1>, vector<8x108xf32>
    %cst_173 = arith.constant 0.000000e+00 : f32
    %599 = vector.broadcast %cst_173 : f32 to vector<8x108xf32>
    %600 = arith.select %593, %599, %598 : vector<8x108xi1>, vector<8x108xf32>
    %cst_174 = arith.constant 0.000000e+00 : f32
    %601 = vector.broadcast %cst_174 : f32 to vector<8x108xf32>
    %602 = arith.subf %601, %591 : vector<8x108xf32>
    %603 = math.exp %602 : vector<8x108xf32>
    %cst_175 = arith.constant 1.000000e+00 : f32
    %604 = vector.broadcast %cst_175 : f32 to vector<8x108xf32>
    %605 = arith.addf %604, %603 : vector<8x108xf32>
    %606 = math.log %605 : vector<8x108xf32>
    %607 = arith.addf %577, %606 : vector<8x108xf32>
    %608 = arith.mulf %600, %591 : vector<8x108xf32>
    %609 = arith.addf %607, %608 : vector<8x108xf32>
    %610 = vector.extract_strided_slice %15 {offsets = [0, 1], sizes = [8, 1], strides = [1, 1]} : vector<8x20xf32> to vector<8x1xf32>
    %611 = vector.extract_strided_slice %20 {offsets = [0, 1], sizes = [8, 1], strides = [1, 1]} : vector<8x20xf32> to vector<8x1xf32>
    %612 = math.exp %610 : vector<8x1xf32>
    %613 = arith.addf %581, %612 : vector<8x1xf32>
    %cst_176 = arith.constant 1.000000e-10 : f32
    %614 = vector.broadcast %cst_176 : f32 to vector<8x1xf32>
    %615 = arith.addf %613, %614 : vector<8x1xf32>
    %616 = math.log %615 : vector<8x1xf32>
    %617 = arith.addf %585, %616 : vector<8x1xf32>
    %618 = vector.broadcast %611 : vector<8x1xf32> to vector<8x108xf32>
    %619 = arith.subf %618, %30 : vector<8x108xf32>
    %620 = vector.broadcast %610 : vector<8x1xf32> to vector<8x108xf32>
    %621 = arith.subf %620, %25 : vector<8x108xf32>
    %cst_177 = arith.constant 1.000000e+00 : f32
    %622 = vector.broadcast %cst_177 : f32 to vector<8x108xf32>
    %623 = arith.mulf %622, %621 : vector<8x108xf32>
    %cst_178 = arith.constant 1.000000e-03 : f32
    %624 = vector.broadcast %cst_178 : f32 to vector<8x108xf32>
    %625 = arith.cmpf oge, %619, %624 : vector<8x108xf32>
    %cst_179 = arith.constant -1.000000e-03 : f32
    %626 = vector.broadcast %cst_179 : f32 to vector<8x108xf32>
    %627 = arith.cmpf ole, %619, %626 : vector<8x108xf32>
    %cst_180 = arith.constant 1.000000e+00 : f32
    %cst_181 = arith.constant 5.000000e-01 : f32
    %628 = vector.broadcast %cst_180 : f32 to vector<8x108xf32>
    %629 = vector.broadcast %cst_181 : f32 to vector<8x108xf32>
    %630 = arith.select %627, %628, %629 : vector<8x108xi1>, vector<8x108xf32>
    %cst_182 = arith.constant 0.000000e+00 : f32
    %631 = vector.broadcast %cst_182 : f32 to vector<8x108xf32>
    %632 = arith.select %625, %631, %630 : vector<8x108xi1>, vector<8x108xf32>
    %cst_183 = arith.constant 0.000000e+00 : f32
    %633 = vector.broadcast %cst_183 : f32 to vector<8x108xf32>
    %634 = arith.subf %633, %623 : vector<8x108xf32>
    %635 = math.exp %634 : vector<8x108xf32>
    %cst_184 = arith.constant 1.000000e+00 : f32
    %636 = vector.broadcast %cst_184 : f32 to vector<8x108xf32>
    %637 = arith.addf %636, %635 : vector<8x108xf32>
    %638 = math.log %637 : vector<8x108xf32>
    %639 = arith.addf %609, %638 : vector<8x108xf32>
    %640 = arith.mulf %632, %623 : vector<8x108xf32>
    %641 = arith.addf %639, %640 : vector<8x108xf32>
    %642 = vector.extract_strided_slice %15 {offsets = [0, 0], sizes = [8, 1], strides = [1, 1]} : vector<8x20xf32> to vector<8x1xf32>
    %643 = vector.extract_strided_slice %20 {offsets = [0, 0], sizes = [8, 1], strides = [1, 1]} : vector<8x20xf32> to vector<8x1xf32>
    %644 = math.exp %642 : vector<8x1xf32>
    %645 = arith.addf %613, %644 : vector<8x1xf32>
    %cst_185 = arith.constant 1.000000e-10 : f32
    %646 = vector.broadcast %cst_185 : f32 to vector<8x1xf32>
    %647 = arith.addf %645, %646 : vector<8x1xf32>
    %648 = math.log %647 : vector<8x1xf32>
    %649 = arith.addf %617, %648 : vector<8x1xf32>
    %650 = vector.broadcast %643 : vector<8x1xf32> to vector<8x108xf32>
    %651 = arith.subf %650, %30 : vector<8x108xf32>
    %652 = vector.broadcast %642 : vector<8x1xf32> to vector<8x108xf32>
    %653 = arith.subf %652, %25 : vector<8x108xf32>
    %cst_186 = arith.constant 1.000000e+00 : f32
    %654 = vector.broadcast %cst_186 : f32 to vector<8x108xf32>
    %655 = arith.mulf %654, %653 : vector<8x108xf32>
    %cst_187 = arith.constant 1.000000e-03 : f32
    %656 = vector.broadcast %cst_187 : f32 to vector<8x108xf32>
    %657 = arith.cmpf oge, %651, %656 : vector<8x108xf32>
    %cst_188 = arith.constant -1.000000e-03 : f32
    %658 = vector.broadcast %cst_188 : f32 to vector<8x108xf32>
    %659 = arith.cmpf ole, %651, %658 : vector<8x108xf32>
    %cst_189 = arith.constant 1.000000e+00 : f32
    %cst_190 = arith.constant 5.000000e-01 : f32
    %660 = vector.broadcast %cst_189 : f32 to vector<8x108xf32>
    %661 = vector.broadcast %cst_190 : f32 to vector<8x108xf32>
    %662 = arith.select %659, %660, %661 : vector<8x108xi1>, vector<8x108xf32>
    %cst_191 = arith.constant 0.000000e+00 : f32
    %663 = vector.broadcast %cst_191 : f32 to vector<8x108xf32>
    %664 = arith.select %657, %663, %662 : vector<8x108xi1>, vector<8x108xf32>
    %cst_192 = arith.constant 0.000000e+00 : f32
    %665 = vector.broadcast %cst_192 : f32 to vector<8x108xf32>
    %666 = arith.subf %665, %655 : vector<8x108xf32>
    %667 = math.exp %666 : vector<8x108xf32>
    %cst_193 = arith.constant 1.000000e+00 : f32
    %668 = vector.broadcast %cst_193 : f32 to vector<8x108xf32>
    %669 = arith.addf %668, %667 : vector<8x108xf32>
    %670 = math.log %669 : vector<8x108xf32>
    %671 = arith.addf %641, %670 : vector<8x108xf32>
    %672 = arith.mulf %664, %655 : vector<8x108xf32>
    %673 = arith.addf %671, %672 : vector<8x108xf32>
    %cst_194 = arith.constant dense<0.000000e+00> : vector<8xf32>
    %674 = vector.multi_reduction <add>, %15, %cst_194 [1] : vector<8x20xf32> to vector<8xf32>
    %675 = vector.shape_cast %674 : vector<8xf32> to vector<8x1xf32>
    %676 = arith.subf %649, %675 : vector<8x1xf32>
    %677 = arith.mulf %676, %10 : vector<8x1xf32>
    %678 = vector.shape_cast %677 : vector<8x1xf32> to vector<1x8x1xf32>
    %cst_195 = arith.constant dense<0.000000e+00> : vector<1xf32>
    %679 = vector.multi_reduction <add>, %678, %cst_195 [1, 2] : vector<1x8x1xf32> to vector<1xf32>
    %680 = vector.shape_cast %679 : vector<1xf32> to vector<1x1x1xf32>
    %681 = vector.extract %680[0, 0, 0] : f32 from vector<1x1x1xf32>
    %682 = vector.broadcast %10 : vector<8x1xf32> to vector<8x108xf32>
    %683 = arith.mulf %673, %682 : vector<8x108xf32>
    %684 = vector.shape_cast %683 : vector<8x108xf32> to vector<1x8x108xf32>
    %cst_196 = arith.constant dense<0.000000e+00> : vector<1xf32>
    %685 = vector.multi_reduction <add>, %684, %cst_196 [1, 2] : vector<1x8x108xf32> to vector<1xf32>
    %686 = vector.shape_cast %685 : vector<1xf32> to vector<1x1x1xf32>
    %687 = vector.extract %686[0, 0, 0] : f32 from vector<1x1x1xf32>
    %c0_197 = arith.constant 0 : index
    %688 = memref.load %arg6[%c0_197] : memref<2xf32, #tpu.memory_space<smem>>
    %689 = arith.addf %688, %681 : f32
    %c0_198 = arith.constant 0 : index
    %690 = memref.load %arg6[%c0_198] : memref<2xf32, #tpu.memory_space<smem>>
    memref.store %689, %arg6[%c0_198] : memref<2xf32, #tpu.memory_space<smem>>
    %c1 = arith.constant 1 : index
    %691 = memref.load %arg6[%c1] : memref<2xf32, #tpu.memory_space<smem>>
    %692 = arith.addf %691, %687 : f32
    %c1_199 = arith.constant 1 : index
    %693 = memref.load %arg6[%c1_199] : memref<2xf32, #tpu.memory_space<smem>>
    memref.store %692, %arg6[%c1_199] : memref<2xf32, #tpu.memory_space<smem>>
    %c0_200 = arith.constant 0 : index
    %694 = memref.load %arg6[%c0_200] : memref<2xf32, #tpu.memory_space<smem>>
    %c0_201 = arith.constant 0 : index
    %695 = memref.load %arg5[%c0_201] : memref<2xf32, #tpu.memory_space<smem>>
    memref.store %694, %arg5[%c0_201] : memref<2xf32, #tpu.memory_space<smem>>
    %c1_202 = arith.constant 1 : index
    %696 = memref.load %arg6[%c1_202] : memref<2xf32, #tpu.memory_space<smem>>
    %c1_203 = arith.constant 1 : index
    %697 = memref.load %arg5[%c1_203] : memref<2xf32, #tpu.memory_space<smem>>
    memref.store %696, %arg5[%c1_203] : memref<2xf32, #tpu.memory_space<smem>>
    return
  }
  func.func @transform_0(%arg0: i32) -> (i32, i32) {
    %c0_i32 = arith.constant 0 : i32
    %c0_i32_0 = arith.constant 0 : i32
    return %arg0, %c0_i32 : i32, i32
  }
  func.func @transform_1(%arg0: i32) -> (i32, i32) {
    %c0_i32 = arith.constant 0 : i32
    %c0_i32_0 = arith.constant 0 : i32
    return %arg0, %c0_i32 : i32, i32
  }
  func.func @transform_2(%arg0: i32) -> (i32, i32) {
    %c0_i32 = arith.constant 0 : i32
    %c0_i32_0 = arith.constant 0 : i32
    return %arg0, %c0_i32 : i32, i32
  }
  func.func @transform_3(%arg0: i32) -> (i32, i32) {
    %c0_i32 = arith.constant 0 : i32
    %c0_i32_0 = arith.constant 0 : i32
    return %arg0, %c0_i32 : i32, i32
  }
  func.func @transform_4(%arg0: i32) -> i32 {
    %c0_i32 = arith.constant 0 : i32
    %c0_i32_0 = arith.constant 0 : i32
    return %c0_i32 : i32
  }
}

</mosaic_0001>

<bundles_post_ra>
// kernel: tpu_custom_call.1
= control target key start
LH: loop header
LB: loop body
LE: loop exit
PB: predicated region body
PF: predicated region fallthrough
CT: control target
= control target key end

     0   :  { %9 = vsyncpa [#allocation4], 0  ;;  %s2256_s0 = inlined_call_operand.hbm [shape: f32[20,20], index: 0, kind: input, shape index: {}]   ;;  %s2257_s1 = inlined_call_operand.hbm [shape: f32[20,20], index: 1, kind: input, shape index: {}]   ;;  %s2258_s2 = inlined_call_operand.hbm [shape: f32[20,108], index: 2, kind: input, shape index: {}]   ;;  %s2259_s3 = inlined_call_operand.hbm [shape: f32[20,108], index: 3, kind: input, shape index: {}]   ;;  %s2260_s4 = inlined_call_operand.hbm [shape: f32[2], index: 4, kind: output, shape index: {}]  }
   0x1   :  { %11 = vsyncpa [#allocation4 + $0x1], 0 }
   0x2   :  { %12 = vsyncpa [#allocation7], 0 }
   0x3   :  { %14 = vsyncpa [#allocation7 + $0x1], 0 }
   0x4   :  { %15 = vsyncpa [#allocation10], 0 }
   0x5   :  { %17 = vsyncpa [#allocation10 + $0x1], 0 }
   0x6   :  { %18 = vsyncpa [#allocation5], 0  ;;  %s1674_s15 = smov 0   ;;  %s1676_s16 = smov 0  }
   0x7   :  { %s1678_s17 = smov 0   ;;  %s1680_s18 = smov 0  }
   0x8 LB: > { %s1693_s19 = sadd.s32 4294967295, %s1599_s18   ;;  %s1696_s20 = sadd.s32 1, %s1599_s18   ;;  %s1599_s18 = sphi %s1680_s18, %s2280_s18   ;;  %s1595_s17 = sphi %s1678_s17, %s2279_s17   ;;  %s1591_s16 = sphi %s1676_s16, %s2278_s16   ;;  %s1587_s15 = sphi %s1674_s15, %s2277_s15  }
   0x9   : > { %s28_s21 = ssub.s32 %s1599_s18, %s1696_s20  ;;  %s31_s22 = sadd.s32 1, %s1595_s17 }
   0xa   : > { %p29_p0 = scmp.eq.s32.totalorder %s28_s21, 0  ;;  %p38_p1 = scmp.ne.s32.totalorder %s1595_s17, %s1591_s16 }
   0xb   : > { %p39_p2 = scmp.eq.s32.totalorder %s1599_s18, 0  ;;  %p44_p3 = scmp.ne.s32.totalorder %s1591_s16, %s1587_s15 }
   0xc   : > { %s1706_s23 = scalar_select %p29_p0, %s1595_s17, %s31_s22  }
   0xd   : > { %p40_p4 = por %p39_p2, %p38_p1  ;;  %p2261_p5 = scmp.eq.s32.totalorder %s1693_s19, 0 }
   0xe   : > { %p1182_p6 = scmp.lt.s32.totalorder %s1599_s18, 3  ;;  %s1717_s25 = sand.u32 1, %s1595_s17  }
   0xf   : > { %p1712_p7 = por %p2261_p5, %p44_p3  ;;  %s1720_s26 = sshll.u32 %s1717_s25, 3 }
  0x10   : > { %s1723_s27 = sshll.u32 %s1599_s18, 7  ;;  %p1725_p8 = pnand %p1182_p6, %p40_p4 }
  0x11   : > { %s2265_s24 = scalar_select %p1712_p7, 1, 0 }
  0x12   : > { %s2266_s28 = scalar_select %p1725_p8, 1, 0 }
  0x13   : > { %s185_s29 = sand.u32 1, %s1599_s18   ;;  %s1734_s6 = scalar_lea.hbm %s2257_s1, %s1723_s27 }
  0x14   : > { %s189_s7 = scalar_lea.vmem [#allocation6], %s1720_s26  ;;  %s1741_s9 = scalar_lea.sflag [#allocation7], %s185_s29 }
  0x15   : > { %s196_s8 = sshll.u32 %s189_s7, 4  ;;  %s1421_s10 = scalar_lea.hbm %s1734_s6, 128  ;;  %s1738_s8 = int_to_ptr.vmem [resolvable:$true] %s196_s8 }
  0x16   : > { %p1422_p11 = scmp.ne.s32.totalorder %s1734_s6, %s1421_s10  ;;  %p1747_p12 = pneg %p1725_p8 }
  0x17   : > { %s1426_s14 = scalar_lea.hbm %s2257_s1, 384  ;;  %p1427_p1 = scmp.lt.u32.totalorder %s1734_s6, %s2257_s1 }
  0x18   : > { %p1424_p13 = pnand %p1747_p12, %p1422_p11  ;;  %p1428_p2 = scmp.lt.u32.totalorder %s1426_s14, %s1421_s10 }
  0x19   : > { %p1430_p4 = scmp.lt.u32.totalorder %s1421_s10, %s1734_s6 }
  0x1a   : > { %p1425_p0 = pneg %p1424_p13  ;;  %p1429_p3 = por %p1428_p2, %p1427_p1 }
  0x1c   : > { %p1431_p6 = por %p1430_p4, %p1429_p3 }
  0x1e   : > { %p1432_p5 = pnand %p1431_p6, %p1425_p0 }
  0x20   : > { %1435 = shalt.err (!%p1432_p5)
}
  0x21   : > { %s1436_s22 = scalar_lea.vmem %s1738_s8, 128  ;;  %s1601_s29 = smov [#allocation6]  }
  0x22   : > { %p1437_p11 = scmp.ne.s32.totalorder %s1738_s8, %s1436_s22  ;;  %s1441_s30 = sshll.u32 %s1601_s29, 4  ;;  %s1442_s30 = int_to_ptr.vmem [resolvable:$false] %s1441_s30 }
  0x23   : > { %s1443_s5 = scalar_lea.vmem %s1442_s30, 256  ;;  %p1444_p10 = scmp.lt.s32.totalorder %s1738_s8, %s1442_s30 }
  0x24   : > { %p1439_p13 = pnand %p1437_p11, %p1747_p12  ;;  %p1445_p7 = scmp.lt.s32.totalorder %s1443_s5, %s1436_s22 }
  0x26   : > { %p1440_p9 = pneg %p1439_p13  ;;  %p1446_p1 = por %p1445_p7, %p1444_p10 }
  0x28   : > { %p1447_p2 = pnand %p1446_p1, %p1440_p9 }
  0x2a   : > { %1450 = shalt.err (!%p1447_p2)
}
  0x2b   : > { %1175 = dma.hbm_to_vmem [thread:$0]  (!%p1725_p8), %s1734_s6, 128, %s1738_s8, %s1741_s9  }
  0x2c   : > { %p2268_p5 = scmp.lt.s32.totalorder %s1599_s18, 4  ;;  %p2269_p0 = scmp.ge.s32.totalorder %s1599_s18, 1 }
  0x2d   : > { %s1783_s13 = scalar_lea.hbm %s2256_s0, %s1723_s27  ;;  %s171_s14 = scalar_lea.vmem [#allocation3], %s1720_s26 }
  0x2e   : > { %p1775_p3 = pnand %p2269_p0, %p2268_p5  ;;  %s178_s15 = sshll.u32 %s171_s14, 4  ;;  %s1786_s15 = int_to_ptr.vmem [resolvable:$true] %s178_s15 }
  0x2f   : > { %s1792_s18 = scalar_lea.hbm %s2258_s2, %s1723_s27  ;;  %s168_s21 = scalar_lea.sflag [#allocation4], %s1717_s25 }
  0x30   : > { %s2270_s7 = scalar_select %p1775_p3, 1, 0 }
  0x31   : > { %s1451_s22 = scalar_lea.hbm %s1783_s13, 128  ;;  %s1456_s5 = scalar_lea.hbm %s2256_s0, 384 }
  0x32   : > { %p1452_p7 = scmp.ne.s32.totalorder %s1783_s13, %s1451_s22  ;;  %p1457_p4 = scmp.lt.u32.totalorder %s1783_s13, %s2256_s0 }
  0x33   : > { %p1458_p6 = scmp.lt.u32.totalorder %s1456_s5, %s1451_s22  ;;  %p1460_p13 = scmp.lt.u32.totalorder %s1451_s22, %s1783_s13 }
  0x34   : > { %p1454_p9 = pnand %p1452_p7, %p1747_p12 }
  0x35   : > { %p1459_p11 = por %p1458_p6, %p1457_p4 }
  0x36   : > { %p1455_p10 = pneg %p1454_p9 }
  0x37   : > { %p1461_p1 = por %p1460_p13, %p1459_p11 }
  0x39   : > { %p1462_p2 = pnand %p1461_p1, %p1455_p10 }
  0x3b   : > { %1465 = shalt.err (!%p1462_p2)
}
  0x3c   : > { %s1466_s14 = scalar_lea.vmem %s1786_s15, 128  ;;  %s1602_s6 = smov [#allocation3]  }
  0x3d   : > { %p1467_p5 = scmp.ne.s32.totalorder %s1786_s15, %s1466_s14  ;;  %s1471_s8 = sshll.u32 %s1602_s6, 4  ;;  %s1472_s8 = int_to_ptr.vmem [resolvable:$false] %s1471_s8 }
  0x3e   : > { %s1473_s29 = scalar_lea.vmem %s1472_s8, 256  ;;  %p1474_p9 = scmp.lt.s32.totalorder %s1786_s15, %s1472_s8 }
  0x3f   : > { %p1469_p0 = pnand %p1467_p5, %p1747_p12  ;;  %p1475_p3 = scmp.lt.s32.totalorder %s1473_s29, %s1466_s14 }
  0x41   : > { %p1470_p7 = pneg %p1469_p0  ;;  %p1476_p4 = por %p1475_p3, %p1474_p9 }
  0x43   : > { %p1477_p6 = pnand %p1476_p4, %p1470_p7 }
  0x45   : > { %1480 = shalt.err (!%p1477_p6)
}
  0x46   : > { %1172 = dma.hbm_to_vmem [thread:$0]  (!%p1725_p8), %s1783_s13, 128, %s1786_s15, %s168_s21  }
  0x47   : > { %s207_s22 = scalar_lea.vmem [#allocation8], %s1720_s26  ;;  %s1481_s5 = scalar_lea.hbm %s1792_s18, 128 }
  0x48   : > { %s214_s30 = sshll.u32 %s207_s22, 4  ;;  %p1482_p10 = scmp.ne.s32.totalorder %s1792_s18, %s1481_s5  ;;  %s215_s30 = int_to_ptr.vmem [resolvable:$true] %s214_s30 }
  0x49   : > { %s1486_s14 = scalar_lea.hbm %s2258_s2, 384  ;;  %p1487_p13 = scmp.lt.u32.totalorder %s1792_s18, %s2258_s2 }
  0x4a   : > { %p1484_p3 = pnand %p1482_p10, %p1747_p12  ;;  %p1488_p1 = scmp.lt.u32.totalorder %s1486_s14, %s1481_s5 }
  0x4b   : > { %p1490_p5 = scmp.lt.u32.totalorder %s1481_s5, %s1792_s18 }
  0x4c   : > { %p1485_p11 = pneg %p1484_p3  ;;  %p1489_p2 = por %p1488_p1, %p1487_p13 }
  0x4e   : > { %p1491_p0 = por %p1490_p5, %p1489_p2 }
  0x50   : > { %p1492_p7 = pnand %p1491_p0, %p1485_p11 }
  0x52   : > { %1495 = shalt.err (!%p1492_p7)
}
  0x53   : > { %s1496_s13 = scalar_lea.vmem %s215_s30, 128  ;;  %s1603_s15 = smov [#allocation8]  }
  0x54   : > { %p1497_p9 = scmp.ne.s32.totalorder %s215_s30, %s1496_s13  ;;  %s1501_s21 = sshll.u32 %s1603_s15, 4  ;;  %s1502_s21 = int_to_ptr.vmem [resolvable:$false] %s1501_s21 }
  0x55   : > { %s1503_s29 = scalar_lea.vmem %s1502_s21, 256  ;;  %p1504_p10 = scmp.lt.s32.totalorder %s215_s30, %s1502_s21 }
  0x56   : > { %p1499_p4 = pnand %p1497_p9, %p1747_p12  ;;  %p1505_p3 = scmp.lt.s32.totalorder %s1503_s29, %s1496_s13 }
  0x58   : > { %p1500_p6 = pneg %p1499_p4  ;;  %p1506_p8 = por %p1505_p3, %p1504_p10 }
  0x5a   : > { %p1507_p1 = pnand %p1506_p8, %p1500_p6 }
  0x5c   : > { %1510 = shalt.err (!%p1507_p1)
}
  0x5d   : > { %p2271_p13 = scmp.ne.s32.totalorder %s2266_s28, 0  ;;  %s1839_s10 = scalar_lea.hbm %s2259_s3, %s1723_s27 }
  0x5e   : > { %s225_s12 = scalar_lea.vmem [#allocation9], %s1720_s26  ;;  %s222_s6 = scalar_lea.sflag [#allocation10], %s1717_s25 }
  0x5f   : > { %1178 = dma.hbm_to_vmem [thread:$0]  (!%p2271_p13), %s1792_s18, 128, %s215_s30, %s1741_s9  }
  0x60   : > { %s232_s14 = sshll.u32 %s225_s12, 4  ;;  %s1511_s8 = scalar_lea.hbm %s1839_s10, 128  ;;  %s233_s14 = int_to_ptr.vmem [resolvable:$true] %s232_s14 }
  0x61   : > { %p1512_p8 = scmp.ne.s32.totalorder %s1839_s10, %s1511_s8  ;;  %s1516_s18 = scalar_lea.hbm %s2259_s3, 384 }
  0x62   : > { %p1517_p5 = scmp.lt.u32.totalorder %s1839_s10, %s2259_s3  ;;  %p1518_p0 = scmp.lt.u32.totalorder %s1516_s18, %s1511_s8 }
  0x63   : > { %p1514_p11 = pnand %p1512_p8, %p1747_p12  ;;  %p1520_p9 = scmp.lt.u32.totalorder %s1511_s8, %s1839_s10 }
  0x64   : > { %p1519_p7 = por %p1518_p0, %p1517_p5 }
  0x65   : > { %p1515_p2 = pneg %p1514_p11 }
  0x66   : > { %p1521_p4 = por %p1520_p9, %p1519_p7 }
  0x68   : > { %p1522_p6 = pnand %p1521_p4, %p1515_p2 }
  0x6a   : > { %1525 = shalt.err (!%p1522_p6)
}
  0x6b   : > { %s1526_s25 = scalar_lea.vmem %s233_s14, 128  ;;  %s1604_s26 = smov [#allocation9]  }
  0x6c   : > { %p1527_p10 = scmp.ne.s32.totalorder %s233_s14, %s1526_s25  ;;  %s1531_s15 = sshll.u32 %s1604_s26, 4  ;;  %s1532_s15 = int_to_ptr.vmem [resolvable:$false] %s1531_s15 }
  0x6d   : > { %s1533_s21 = scalar_lea.vmem %s1532_s15, 256  ;;  %p1534_p8 = scmp.lt.s32.totalorder %s233_s14, %s1532_s15 }
  0x6e   : > { %p1529_p3 = pnand %p1527_p10, %p1747_p12  ;;  %p1535_p11 = scmp.lt.s32.totalorder %s1533_s21, %s1526_s25 }
  0x70   : > { %p1530_p1 = pneg %p1529_p3  ;;  %p1536_p13 = por %p1535_p11, %p1534_p8 }
  0x72   : > { %p1537_p0 = pnand %p1536_p13, %p1530_p1 }
  0x74   : > { %1540 = shalt.err (!%p1537_p0)
}
  0x75   : > { %p2272_p5 = scmp.ne.s32.totalorder %s2266_s28, 0  ;;  %p2273_p2 = scmp.ne.s32.totalorder %s2270_s7, 0 }
  0x76   : > { %s243_s11 = sand.u32 (!%p2273_p2), 1, %s1591_s16   ;;  %p2274_p12 = scmp.ne.s32.totalorder (!%p2273_p2), %s2265_s24, 0 }
  0x77   : > { %1181 = dma.hbm_to_vmem [thread:$0]  (!%p2272_p5), %s1839_s10, 128, %s233_s14, %s222_s6  }
  0x78   : > { %241 = sbr.rel (%p2273_p2) target bundleno = 749 (0x2ed), region = 36  ;;  %s1863_s29 = sshll.u32 (!%p2273_p2), %s243_s11, 3 }
  0x79   : > { %s244_s22 = scalar_lea.sflag (!%p2273_p2), [#allocation4], %s243_s11  ;;  %s247_s5 = scalar_lea.vmem (!%p2273_p2), [#allocation3], %s1863_s29 }
  0x7f   : > { %1570 = dma.done.wait (%p2274_p12), %s244_s22, 128  }
  0x80   : > { %1572 = vsyncadd (%p2274_p12), %s244_s22, 4294967168  ;;  %s252_s28 = sand.u32 1, %s1693_s19   ;;  %s256_s7 = scalar_lea.vmem [#allocation6], %s1863_s29 }
  0x81   : > { %s253_s10 = scalar_lea.sflag [#allocation7], %s252_s28 }
  0x82   : > { %1574 = dma.done.wait (%p2274_p12), %s253_s10, 256  }
  0x83   : > { %1576 = vsyncadd (%p2274_p12), %s253_s10, 4294967040  ;;  %s265_s12 = scalar_lea.vmem [#allocation8], %s1863_s29  ;;  %s271_s14 = scalar_lea.sflag [#allocation10], %s243_s11 }
  0x84   : > { %s274_s6 = scalar_lea.vmem [#allocation9], %s1863_s29 }
  0x85   : > { %1578 = dma.done.wait (%p2274_p12), %s271_s14, 128  }
  0x86   : > { %1580 = vsyncadd (%p2274_p12), %s271_s14, 4294967168  ;;  %s1142_s8 = sshll.u32 %s1693_s19, 3  ;;  %v318_v0 = vlaneseq  ;;  %v1605_v1 = vmov 16   ;;  %v1606_v2 = vmov 18   ;;  %v325_v6 = vld [vmem:[%s247_s5] sm:$0xff]  ;;  %v1607_v9 = vmov 15  }
  0x87   : > { %1263 = vset.pattern.permute.xlu0 %v1605_v1  ;;  %1262 = vset.pattern.permute.xlu1 %v1606_v2  ;;  %v320_v3 = vstv %s1142_s8  ;;  %v1608_v10 = vmov 12   ;;  %v1609_v11 = vmov 19   ;;  %v328_v13 = vld [vmem:[%s256_s7] sm:$0xff]  ;;  %s1610_s24 = smov 2   ;;  %s1611_s13 = smov 1   ;;  %v1615_v15 = vmov 11  }
  0x88   : > { %v319_v4 = vshrl.u32 %v318_v0, 7  ;;  %s1612_s9 = smov 3   ;;  %s1613_s18 = smov 4   ;;  %v1618_v16 = vmov 17   ;;  %v1622_v17 = vmov 9   ;;  %v1625_v18 = vmov 8  }
  0x89   : > { %s1614_s30 = smov 14   ;;  %s1616_s27 = smov 5   ;;  %v1627_v19 = vmov 14   ;;  %v1630_v20 = vmov 7   ;;  %v1631_v21 = vmov 13   ;;  %v1633_v22 = vmov 10  }
  0x8a   : > { %v1885_v5 = vadd.s32 %v320_v3, %v319_v4  ;;  %s1617_s25 = smov 6   ;;  %s1619_s26 = smov 7   ;;  %v1635_v23 = vmov 6   ;;  %v1636_v24 = vmov 5   ;;  %v1639_v25 = vmov 2   ;;  %v330_v50 = vld [vmem:[%s265_s12] sm:$0xff] }
  0x8b   : > { %s1620_s15 = smov 8   ;;  %s1621_s21 = smov 18   ;;  %v1640_v26 = vmov 0   ;;  %vm956_vm1 = vcmask 162816   ;;  %v1641_v37 = vmov 4   ;;  %v1642_v40 = vmov 3  }
  0x8c   : > { %vm322_vm0 = vcmp.lt.s32.totalorder %v1885_v5, 20  ;;  %s1623_s11 = smov 9   ;;  %s1624_s22 = smov 10   ;;  %v1643_v46 = vmov 1  }
  0x8d   : > { %v1890_v7 = vsel %vm322_vm0, %v325_v6, 0.0  ;;  %v1907_v14 = vsel %vm322_vm0, %v328_v13, 0.0  ;;  %s1626_s5 = smov 11   ;;  %s1628_s28 = smov 12   ;;  %v2003_v53 = vsel %vm322_vm0, %v330_v50, 0.0 }
  0x8e   : > { %443 = vperm.xlu0 %1263, %v1890_v7   ;;  %v334_v8 = vmul.f32 1.442695, %v1890_v7  ;;  %381 = vperm.xlu1 %1262, %v1890_v7   ;;  %s1629_s10 = smov 13   ;;  %s1632_s7 = smov 15   ;;  %v957_v27 = vsel %vm956_vm1, %v1890_v7, 0.0 }
  0x8f   : > { %s1634_s14 = smov 16   ;;  %s1637_s8 = smov 17  }
  0x90   : > { %1299 = vpow2.f32 %v334_v8  ;;  %s1646_s29 = smov 109   ;;  %s1647_s12 = smov 0.0  }
  0x91   : > { %p2275_p13 = scmp.eq.s32.totalorder %s1693_s19, 0  ;;  %p1184_p9 = scmp.eq.s32.totalorder %s1693_s19, 2 }
  0x92   : > { %1264 = vset.pattern.permute.xlu0 %v1607_v9  ;;  %1266 = vset.pattern.permute.xlu1 %v1608_v10 }
  0x93   : > { %474 = vperm.xlu0 %1264, %v1890_v7   ;;  %1163 = sst [smem:[#allocation2]] (%p2275_p13), %s1647_s12  ;;  %p2276_p7 = pmov %p2275_p13 }
  0x95   : > { %1164 = sst [smem:[#allocation2 + $0x1]] (%p2276_p7), %s1647_s12 }
  0x97   : > { %1265 = vset.pattern.permute.xlu0 %v1609_v11 }
  0x98   : > { %349 = vperm.xlu0 %1265, %v1890_v7  }
  0x9a   : > { %v1899_v12 = vpop.eup %1299 }
  0x9b   : > { %398 = vrot.lane.b32.xlu1 %v1899_v12, %s1610_s24  ;;  %s1638_s24 = smov 19   ;;  %v337_v57 = vadd.f32 1e-10, %v1899_v12 }
  0x9c   : > { %367 = vrot.lane.b32.xlu0 %v1899_v12, %s1611_s13  ;;  %s1144_s13 = sld [smem:[#allocation2 + $0x1]] }
  0x9d   : > { %1301 = vlog2.f32 %v337_v57 }
  0x9f   : > { %429 = vrot.lane.b32.xlu1 %v1899_v12, %s1612_s9 }
  0xa0   : > { %343 = vperm.xlu0 %1265, %v1907_v14  }
  0xa3   : > { %460 = vrot.lane.b32.xlu1 %v1899_v12, %s1613_s18 }
  0xa4   : > { %770 = vrot.lane.b32.xlu0 %v1899_v12, %s1614_s30 }
  0xa5   : > { %1268 = vset.pattern.permute.xlu0 %v1615_v15 }
  0xa7   : > { %491 = vrot.lane.b32.xlu1 %v1899_v12, %s1616_s27 }
  0xa8   : > { %598 = vperm.xlu0 %1268, %v1890_v7  }
  0xab   : > { %522 = vrot.lane.b32.xlu1 %v1899_v12, %s1617_s25 }
  0xac   : > { %1269 = vset.pattern.permute.xlu0 %v1618_v16 }
  0xad   : > { %412 = vperm.xlu0 %1269, %v1890_v7  }
  0xaf   : > { %553 = vrot.lane.b32.xlu1 %v1899_v12, %s1619_s26 }
  0xb1   : > { %407 = vperm.xlu0 %1269, %v1907_v14  }
  0xb3   : > { %584 = vrot.lane.b32.xlu1 %v1899_v12, %s1620_s15  ;;  %s1541_s15 = scalar_lea.hbm %s2260_s4, 16 }
  0xb4   : > { %p1542_p4 = scmp.ne.s32.totalorder %s2260_s4, %s1541_s15  ;;  %p1547_p3 = scmp.lt.u32.totalorder %s1541_s15, %s2260_s4 }
  0xb5   : > { %894 = vrot.lane.b32.xlu0 %v1899_v12, %s1621_s21 }
  0xb6   : > { %1272 = vset.pattern.permute.xlu0 %v1622_v17  ;;  %p1543_p6 = pnand %p1542_p4, %p1184_p9 }
  0xb7   : > { %615 = vrot.lane.b32.xlu1 %v1899_v12, %s1623_s11 }
  0xb8   : > { %p1544_p10 = pneg %p1543_p6 }
  0xb9   : > { %660 = vperm.xlu0 %1272, %v1890_v7  }
  0xba   : > { %p1549_p1 = pnand %p1547_p3, %p1544_p10 }
  0xbb   : > { %646 = vrot.lane.b32.xlu1 %v1899_v12, %s1624_s22 }
  0xbd   : > { %1274 = vset.pattern.permute.xlu0 %v1625_v18 }
  0xbe   : > { %691 = vperm.xlu0 %1274, %v1890_v7  }
  0xbf   : > { %677 = vrot.lane.b32.xlu1 %v1899_v12, %s1626_s5 }
  0xc2   : > { %1275 = vset.pattern.permute.xlu0 %v1627_v19 }
  0xc3   : > { %708 = vrot.lane.b32.xlu1 %v1899_v12, %s1628_s28  ;;  %505 = vperm.xlu0 %1275, %v1890_v7  }
  0xc7   : > { %567 = vperm.xlu1 %1266, %v1890_v7   ;;  %500 = vperm.xlu0 %1275, %v1907_v14  }
  0xcb   : > { %739 = vrot.lane.b32.xlu1 %v1899_v12, %s1629_s10  ;;  %1276 = vset.pattern.permute.xlu0 %v1630_v20 }
  0xcc   : > { %722 = vperm.xlu0 %1276, %v1890_v7   ;;  %1267 = vset.pattern.permute.xlu1 %v1606_v2 }
  0xcf   : > { %376 = vperm.xlu1 %1267, %v1907_v14  }
  0xd0   : > { %1277 = vset.pattern.permute.xlu0 %v1631_v21  ;;  %v1302_v21 = vpop.eup %1301 }
  0xd1   : > { %536 = vperm.xlu0 %1277, %v1890_v7  }
  0xd3   : > { %801 = vrot.lane.b32.xlu1 %v1899_v12, %s1632_s7 }
  0xd4   : > { %1270 = vset.pattern.permute.xlu1 %v1633_v22 }
  0xd5   : > { %531 = vperm.xlu0 %1277, %v1907_v14  }
  0xd7   : > { %832 = vrot.lane.b32.xlu1 %v1899_v12, %s1634_s14 }
  0xd9   : > { %1278 = vset.pattern.permute.xlu0 %v1635_v23 }
  0xda   : > { %753 = vperm.xlu0 %1278, %v1890_v7  }
  0xdb   : > { %629 = vperm.xlu1 %1270, %v1890_v7  }
  0xde   : > { %1280 = vset.pattern.permute.xlu0 %v1636_v24 }
  0xdf   : > { %863 = vrot.lane.b32.xlu1 %v1899_v12, %s1637_s8  ;;  %784 = vperm.xlu0 %1280, %v1890_v7  }
  0xe0   : > { %1271 = vset.pattern.permute.xlu1 %v1605_v1 }
  0xe3   : > { %438 = vperm.xlu1 %1271, %v1907_v14   ;;  %1281 = vset.pattern.permute.xlu0 %v1615_v15 }
  0xe4   : > { %593 = vperm.xlu0 %1281, %v1907_v14  }
  0xe7   : > { %925 = vrot.lane.b32.xlu1 %v1899_v12, %s1638_s24 }
  0xe8   : > { %1283 = vset.pattern.permute.xlu0 %v1633_v22  ;;  %1273 = vset.pattern.permute.xlu1 %v1607_v9 }
  0xe9   : > { %624 = vperm.xlu0 %1283, %v1907_v14  }
  0xeb   : > { %469 = vperm.xlu1 %1273, %v1907_v14  }
  0xed   : > { %1286 = vset.pattern.permute.xlu0 %v1639_v25 }
  0xee   : > { %877 = vperm.xlu0 %1286, %v1890_v7  }
  0xef   : > { %1279 = vset.pattern.permute.xlu1 %v1608_v10 }
  0xf2   : > { %1289 = vset.pattern.permute.xlu0 %v1630_v20 }
  0xf3   : > { %717 = vperm.xlu0 %1289, %v1907_v14  }
  0xf7   : > { %1292 = vset.pattern.permute.xlu0 %v1636_v24 }
  0xf8   : > { %779 = vperm.xlu0 %1292, %v1907_v14  }
  0xfc   : > { %1295 = vset.pattern.permute.xlu0 %v1639_v25 }
  0xfd   : > { %872 = vperm.xlu0 %1295, %v1907_v14  }
 0x101   : > { %1298 = vset.pattern.permute.xlu0 %v1640_v26 }
 0x10d   : > { %v382_v28 = vpop.permute.xlu1 %381  ;;  %v444_v31 = vpop.permute.xlu0 %443 }
 0x10e   : > { %v2016_v61 = vsub.f32 %v382_v28, %v2003_v53  ;;  %v2023_v0 = vsub.f32 %v444_v31, %v2003_v53  ;;  %v339_v28 = vmul.f32 0.6931472, %v1302_v21  ;;  %v332_v31 = vld [vmem:[%s274_s6] sm:$0xff]  ;;  %v1644_v21 = vmov 0.5   ;;  %s989_s6 = sld [smem:[#allocation2]] }
 0x10f   : > { %958 = vadd.xlane.f32.xlu1 %v957_v27 }
 0x110   : > { %v389_v3 = vsub.f32 0.0, %v2016_v61  ;;  %v451_v8 = vsub.f32 0.0, %v2023_v0 }
 0x111   : > { %v399_v29 = vpop.permute.xlu1 %398 }
 0x112   : > { %v475_v33 = vpop.permute.xlu0 %474  ;;  %v390_v13 = vmul.f32 1.442695, %v389_v3  ;;  %v452_v16 = vmul.f32 1.442695, %v451_v8 }
 0x115   : > { %v430_v30 = vpop.permute.xlu1 %429 }
 0x117   : > { %v350_v36 = vpop.permute.xlu0 %349 }
 0x118   : > { %v2010_v56 = vsub.f32 %v350_v36, %v2003_v53 }
 0x119   : > { %v1961_v32 = vpop.permute.xlu1 %460 }
 0x11a   : > { %v357_v62 = vsub.f32 0.0, %v2010_v56 }
 0x11b   : > { %v368_v39 = vpop.permute.xlu0 %367 }
 0x11c   : > { %v370_v54 = vadd.f32 %v1899_v12, %v368_v39  ;;  %v358_v4 = vmul.f32 1.442695, %v357_v62 }
 0x11d   : > { %v1963_v34 = vpop.permute.xlu1 %491 }
 0x11e   : > { %v371_v59 = vadd.f32 1e-10, %v370_v54  ;;  %v401_v60 = vadd.f32 %v399_v29, %v370_v54 }
 0x11f   : > { %v1974_v42 = vpop.permute.xlu0 %343 }
 0x120   : > { %562 = vperm.xlu1 %1279, %v1907_v14   ;;  %1303 = vlog2.f32 %v371_v59  ;;  %v402_v1 = vadd.f32 1e-10, %v401_v60  ;;  %v432_v2 = vadd.f32 %v430_v30, %v401_v60 }
 0x121   : > { %v1966_v35 = vpop.permute.xlu1 %522 }
 0x122   : > { %1305 = vlog2.f32 %v402_v1  ;;  %v433_v10 = vadd.f32 1e-10, %v432_v2  ;;  %v463_v11 = vadd.f32 %v1961_v32, %v432_v2 }
 0x123   : > { %v1980_v44 = vpop.permute.xlu0 %770  ;;  %1307 = vpow2.f32 %v358_v4 }
 0x124   : > { %1282 = vset.pattern.permute.xlu1 %v1641_v37  ;;  %1309 = vlog2.f32 %v433_v10  ;;  %v464_v19 = vadd.f32 1e-10, %v463_v11  ;;  %v494_v20 = vadd.f32 %v1963_v34, %v463_v11 }
 0x125   : > { %815 = vperm.xlu1 %1282, %v1890_v7   ;;  %v1969_v38 = vpop.permute.xlu1 %553  ;;  %1311 = vpow2.f32 %v390_v13 }
 0x126   : > { %1313 = vpow2.f32 %v452_v16  ;;  %v525_v27 = vadd.f32 %v1966_v35, %v494_v20  ;;  %v2056_v35 = vsel %vm322_vm0, %v332_v31, 0.0 }
 0x127   : > { %v1986_v47 = vpop.permute.xlu0 %598  ;;  %1315 = vlog2.f32 %v464_v19  ;;  %v346_v57 = vsub.f32 %v1974_v42, %v2056_v35 }
 0x128   : > { %v556_v34 = vadd.f32 %v1969_v38, %v525_v27 }
 0x129   : > { %1284 = vset.pattern.permute.xlu1 %v1642_v40  ;;  %v1972_v41 = vpop.permute.xlu1 %584  ;;  %vm354_vm2 = vcmp.le.f32.partialorder %v346_v57, -0.001  ;;  %vm353_vm3 = vcmp.ge.f32.partialorder %v346_v57, 0.001 }
 0x12a   : > { %846 = vperm.xlu1 %1284, %v1890_v7   ;;  %v1304_v22 = vpop.eup %1303  ;;  %v557_v54 = vadd.f32 1e-10, %v556_v34  ;;  %v587_v38 = vadd.f32 %v1972_v41, %v556_v34 }
 0x12b   : > { %v373_v29 = vmul.f32 0.6931472, %v1304_v22  ;;  %v355_v22 = vsel %vm354_vm2, 1.0, %v1644_v21 }
 0x12c   : > { %v413_v49 = vpop.permute.xlu0 %412  ;;  %v1306_v30 = vpop.eup %1305  ;;  %v588_v10 = vadd.f32 1e-10, %v587_v38  ;;  %v356_v31 = vsel %vm353_vm3, 0.0, %v355_v22 }
 0x12d   : > { %v1978_v43 = vpop.permute.xlu1 %615  ;;  %v2034_v9 = vsub.f32 %v413_v49, %v2003_v53  ;;  %v1308_v32 = vpop.eup %1307  ;;  %v404_v39 = vmul.f32 0.6931472, %v1306_v30 }
 0x12e   : > { %1285 = vset.pattern.permute.xlu1 %v1622_v17  ;;  %v618_v3 = vadd.f32 %v1978_v43, %v587_v38  ;;  %v364_v38 = vmul.f32 %v356_v31, %v2010_v56 }
 0x12f   : > { %655 = vperm.xlu1 %1285, %v1907_v14   ;;  %v420_v17 = vsub.f32 0.0, %v2034_v9 }
 0x130   : > { %v1999_v52 = vpop.permute.xlu0 %407  ;;  %v619_v19 = vadd.f32 1e-10, %v618_v3 }
 0x131   : > { %v1984_v45 = vpop.permute.xlu1 %646  ;;  %v421_v25 = vmul.f32 1.442695, %v420_v17 }
 0x132   : > { %v649_v43 = vadd.f32 %v1984_v45, %v618_v3 }
 0x133   : > { %1287 = vset.pattern.permute.xlu1 %v1625_v18 }
 0x134   : > { %686 = vperm.xlu1 %1287, %v1907_v14   ;;  %v2013_v58 = vpop.permute.xlu0 %894  ;;  %v650_v30 = vadd.f32 1e-10, %v649_v43 }
 0x135   : > { %v1990_v48 = vpop.permute.xlu1 %677 }
 0x138   : > { %1288 = vset.pattern.permute.xlu1 %v1643_v46  ;;  %v2026_v6 = vpop.permute.xlu0 %660 }
 0x139   : > { %908 = vperm.xlu1 %1288, %v1890_v7   ;;  %v1997_v51 = vpop.permute.xlu1 %708 }
 0x13d   : > { %1290 = vset.pattern.permute.xlu1 %v1640_v26  ;;  %v2042_v18 = vpop.permute.xlu0 %691 }
 0x13e   : > { %939 = vperm.xlu1 %1290, %v1890_v7   ;;  %v2029_v7 = vsub.f32 %v475_v33, %v2003_v53  ;;  %v526_v33 = vadd.f32 1e-10, %v525_v27 }
 0x140   : > { %v482_v15 = vsub.f32 0.0, %v2029_v7 }
 0x142   : > { %1291 = vset.pattern.permute.xlu1 %v1635_v23  ;;  %v483_v23 = vmul.f32 1.442695, %v482_v15 }
 0x143   : > { %748 = vperm.xlu1 %1291, %v1907_v14  }
 0x144   : > { %1317 = vpow2.f32 %v483_v23 }
 0x145   : > { %1319 = vpow2.f32 %v421_v25 }
 0x146   : > { %v2006_v55 = vpop.permute.xlu1 %567 }
 0x147   : > { %1293 = vset.pattern.permute.xlu1 %v1641_v37  ;;  %v374_v37 = vadd.f32 %v373_v29, %v339_v28 }
 0x148   : > { %810 = vperm.xlu1 %1293, %v1907_v14  }
 0x149   : > { %v405_v60 = vadd.f32 %v404_v39, %v374_v37 }
 0x14a   : > { %v2020_v63 = vpop.permute.xlu1 %739 }
 0x14c   : > { %1294 = vset.pattern.permute.xlu1 %v1642_v40  ;;  %v1310_v40 = vpop.eup %1309 }
 0x14d   : > { %841 = vperm.xlu1 %1294, %v1907_v14   ;;  %v1312_v49 = vpop.eup %1311  ;;  %v435_v62 = vmul.f32 0.6931472, %v1310_v40 }
 0x14e   : > { %v2037_v12 = vpop.permute.xlu1 %376  ;;  %v1314_v59 = vpop.eup %1313  ;;  %v392_v2 = vadd.f32 1.0, %v1312_v49 }
 0x14f   : > { %v1316_v1 = vpop.eup %1315  ;;  %v454_v13 = vadd.f32 1.0, %v1314_v59  ;;  %v436_v41 = vadd.f32 %v435_v62, %v405_v60 }
 0x150   : > { %v1318_v8 = vpop.eup %1317  ;;  %v466_v15 = vmul.f32 0.6931472, %v1316_v1 }
 0x151   : > { %1296 = vset.pattern.permute.xlu1 %v1643_v46  ;;  %v360_v46 = vadd.f32 1.0, %v1308_v32  ;;  %v1320_v42 = vpop.eup %1319 }
 0x152   : > { %903 = vperm.xlu1 %1296, %v1907_v14   ;;  %v2046_v24 = vpop.permute.xlu1 %801  ;;  %v423_v23 = vadd.f32 1.0, %v1320_v42  ;;  %v467_v28 = vadd.f32 %v466_v15, %v436_v41 }
 0x156   : > { %1297 = vset.pattern.permute.xlu1 %v1640_v26  ;;  %v495_v26 = vadd.f32 1e-10, %v494_v20  ;;  %v2052_v36 = vpop.permute.xlu1 %832  ;;  %v485_v20 = vadd.f32 1.0, %v1318_v8 }
 0x157   : > { %934 = vperm.xlu1 %1297, %v1907_v14   ;;  %v506_v14 = vpop.permute.xlu0 %505 }
 0x158   : > { %1321 = vlog2.f32 %v495_v26  ;;  %v2067_v11 = vsub.f32 %v506_v14, %v2003_v53  ;;  %v379_v26 = vsub.f32 %v2037_v12, %v2056_v35  ;;  %v680_v14 = vadd.f32 %v1990_v48, %v649_v43 }
 0x159   : > { %1323 = vlog2.f32 %v526_v33  ;;  %v410_v48 = vsub.f32 %v1999_v52, %v2056_v35 }
 0x15a   : > { %1325 = vlog2.f32 %v360_v46  ;;  %v2064_v4 = vpop.permute.xlu1 %629  ;;  %v513_v25 = vsub.f32 0.0, %v2067_v11  ;;  %v711_v32 = vadd.f32 %v1997_v51, %v680_v14  ;;  %vm386_vm4 = vcmp.le.f32.partialorder %v379_v26, -0.001 }
 0x15b   : > { %v2058_v50 = vpop.permute.xlu0 %500  ;;  %1327 = vlog2.f32 %v557_v54  ;;  %v681_v54 = vadd.f32 1e-10, %v680_v14  ;;  %vm385_vm5 = vcmp.ge.f32.partialorder %v379_v26, 0.001  ;;  %v387_v59 = vsel %vm386_vm4, 1.0, %v1644_v21 }
 0x15c   : > { %1329 = vlog2.f32 %v392_v2  ;;  %v514_v37 = vmul.f32 1.442695, %v513_v25  ;;  %v742_v46 = vadd.f32 %v2020_v63, %v711_v32  ;;  %v712_v62 = vadd.f32 1e-10, %v711_v32 }
 0x15d   : > { %1331 = vlog2.f32 %v588_v10  ;;  %vm417_vm6 = vcmp.le.f32.partialorder %v410_v48, -0.001  ;;  %v388_v10 = vsel %vm385_vm5, 0.0, %v387_v59  ;;  %vm416_vm7 = vcmp.ge.f32.partialorder %v410_v48, 0.001 }
 0x15e   : > { %v2076_v27 = vpop.permute.xlu1 %863  ;;  %1333 = vlog2.f32 %v454_v13  ;;  %v773_v52 = vadd.f32 %v1980_v44, %v742_v46  ;;  %v743_v8 = vadd.f32 1e-10, %v742_v46  ;;  %v396_v25 = vmul.f32 %v388_v10, %v2016_v61 }
 0x15f   : > { %v2069_v16 = vpop.permute.xlu0 %722  ;;  %1335 = vlog2.f32 %v619_v19  ;;  %v2095_v19 = vsub.f32 %v2006_v55, %v2003_v53 }
 0x160   : > { %1337 = vlog2.f32 %v485_v20  ;;  %v804_v41 = vadd.f32 %v2046_v24, %v773_v52  ;;  %v2103_v24 = vsub.f32 %v1986_v47, %v2003_v53 }
 0x161   : > { %1339 = vlog2.f32 %v423_v23  ;;  %v575_v32 = vsub.f32 0.0, %v2095_v19 }
 0x162   : > { %v1322_v17 = vpop.eup %1321  ;;  %1341 = vlog2.f32 %v650_v30  ;;  %v439_v57 = vpop.permute.xlu1 %438  ;;  %v835_v26 = vadd.f32 %v2052_v36, %v804_v41 }
 0x163   : > { %v497_v29 = vmul.f32 0.6931472, %v1322_v17  ;;  %v1324_v45 = vpop.eup %1323  ;;  %v537_v33 = vpop.permute.xlu0 %536  ;;  %1343 = vpow2.f32 %v514_v37  ;;  %v418_v17 = vsel %vm417_vm6, 1.0, %v1644_v21  ;;  %v441_v30 = vsub.f32 %v439_v57, %v2056_v35 }
 0x164   : > { %v1326_v34 = vpop.eup %1325  ;;  %v2082_v12 = vsub.f32 %v537_v33, %v2003_v53  ;;  %v528_v40 = vmul.f32 0.6931472, %v1324_v45  ;;  %1345 = vlog2.f32 %v681_v54  ;;  %v419_v55 = vsel %vm416_vm7, 0.0, %v418_v17 }
 0x165   : > { %v498_v39 = vadd.f32 %v497_v29, %v467_v28  ;;  %v1328_v49 = vpop.eup %1327  ;;  %v362_v51 = vmul.f32 0.6931472, %v1326_v34  ;;  %1347 = vlog2.f32 %v712_v62  ;;  %v774_v29 = vadd.f32 1e-10, %v773_v52 }
 0x166   : > { %v1330_v60 = vpop.eup %1329  ;;  %v544_v1 = vsub.f32 0.0, %v2082_v12  ;;  %v559_v3 = vmul.f32 0.6931472, %v1328_v49  ;;  %v926_v44 = vpop.permute.xlu1 %925  ;;  %1349 = vlog2.f32 %v743_v8  ;;  %v805_v33 = vadd.f32 1e-10, %v804_v41 }
 0x167   : > { %v529_v2 = vadd.f32 %v528_v40, %v498_v39  ;;  %v1332_v63 = vpop.eup %1331  ;;  %v394_v13 = vmul.f32 0.6931472, %v1330_v60  ;;  %v365_v56 = vadd.f32 %v364_v38, %v362_v51  ;;  %v866_v61 = vadd.f32 %v2076_v27, %v835_v26  ;;  %v532_v17 = vpop.permute.xlu0 %531 }
 0x168   : > { %v1334_v42 = vpop.eup %1333  ;;  %v545_v43 = vmul.f32 1.442695, %v544_v1  ;;  %v590_v23 = vmul.f32 0.6931472, %v1332_v63  ;;  %v836_v47 = vadd.f32 1e-10, %v835_v26  ;;  %v427_v54 = vmul.f32 %v419_v55, %v2034_v9 }
 0x169   : > { %v1336_v15 = vpop.eup %1335  ;;  %v560_v22 = vadd.f32 %v559_v3, %v529_v2  ;;  %v395_v45 = vadd.f32 %v394_v13, %v365_v56  ;;  %v606_v40 = vsub.f32 0.0, %v2103_v24  ;;  %vm448_vm8 = vcmp.le.f32.partialorder %v441_v30, -0.001 }
 0x16a   : > { %v2097_v20 = vpop.eup %1337  ;;  %v621_v14 = vmul.f32 0.6931472, %v1336_v15  ;;  %1351 = vpow2.f32 %v545_v43  ;;  %v470_v48 = vpop.permute.xlu1 %469  ;;  %v576_v51 = vmul.f32 1.442695, %v575_v32  ;;  %v867_v38 = vadd.f32 1e-10, %v866_v61 }
 0x16b   : > { %v1340_v28 = vpop.eup %1339  ;;  %v591_v36 = vadd.f32 %v590_v23, %v560_v22  ;;  %v397_v37 = vadd.f32 %v396_v25, %v395_v45  ;;  %1353 = vlog2.f32 %v774_v29  ;;  %v897_v27 = vadd.f32 %v2013_v58, %v866_v61 }
 0x16c   : > { %v1342_v31 = vpop.eup %1341  ;;  %v425_v34 = vmul.f32 0.6931472, %v1340_v28  ;;  %1355 = vlog2.f32 %v805_v33  ;;  %v472_v62 = vsub.f32 %v470_v48, %v2056_v35  ;;  %v2115_v2 = vsub.f32 %v2064_v4, %v2003_v53 }
 0x16d   : > { %v1344_v39 = vpop.eup %1343  ;;  %v622_v46 = vadd.f32 %v621_v14, %v591_v36  ;;  %v652_v49 = vmul.f32 0.6931472, %v1342_v31  ;;  %1357 = vlog2.f32 %v836_v47  ;;  %vm447_vm9 = vcmp.ge.f32.partialorder %v441_v30, 0.001 }
 0x16e   : > { %v1346_v57 = vpop.eup %1345  ;;  %v516_v59 = vadd.f32 1.0, %v1344_v39  ;;  %v426_v60 = vadd.f32 %v425_v34, %v397_v37  ;;  %v449_v9 = vsel %vm448_vm8, 1.0, %v1644_v21  ;;  %v928_v3 = vadd.f32 %v926_v44, %v897_v27  ;;  %v754_v37 = vpop.permute.xlu0 %753 }
 0x16f   : > { %v1348_v1 = vpop.eup %1347  ;;  %v456_v52 = vmul.f32 0.6931472, %v1334_v42  ;;  %v607_v63 = vmul.f32 1.442695, %v606_v40  ;;  %v683_v8 = vmul.f32 0.6931472, %v1346_v57  ;;  %v653_v13 = vadd.f32 %v652_v49, %v622_v46 }
 0x170   : > { %v1350_v10 = vpop.eup %1349  ;;  %v2120_v58 = vsub.f32 %v2026_v6, %v2003_v53  ;;  %1359 = vlog2.f32 %v867_v38  ;;  %v898_v56 = vadd.f32 1e-10, %v897_v27  ;;  %v714_v41 = vmul.f32 0.6931472, %v1348_v1 }
 0x171   : > { %1361 = vlog2.f32 %v516_v59  ;;  %v450_v15 = vsel %vm447_vm9, 0.0, %v449_v9  ;;  %vm479_vm10 = vcmp.le.f32.partialorder %v472_v62, -0.001  ;;  %v637_v43 = vsub.f32 0.0, %v2115_v2 }
 0x172   : > { %1363 = vpow2.f32 %v576_v51  ;;  %v428_v42 = vadd.f32 %v427_v54, %v426_v60  ;;  %v929_v44 = vadd.f32 1e-10, %v928_v3  ;;  %v684_v22 = vadd.f32 %v683_v8, %v653_v13  ;;  %v785_v3 = vpop.permute.xlu0 %784 }
 0x173   : > { %1365 = vpow2.f32 %v607_v63  ;;  %v745_v23 = vmul.f32 0.6931472, %v1350_v10  ;;  %v458_v6 = vmul.f32 %v450_v15, %v2023_v0  ;;  %vm478_vm11 = vcmp.ge.f32.partialorder %v472_v62, 0.001 }
 0x174   : > { %v1352_v4 = vpop.eup %1351  ;;  %1367 = vlog2.f32 %v898_v56  ;;  %v480_v26 = vsel %vm479_vm10, 1.0, %v1644_v21  ;;  %v715_v28 = vadd.f32 %v714_v41, %v684_v22  ;;  %v668_v29 = vsub.f32 0.0, %v2120_v58 }
 0x175   : > { %v1354_v25 = vpop.eup %1353  ;;  %v503_v14 = vsub.f32 %v2058_v50, %v2056_v35  ;;  %v547_v55 = vadd.f32 1.0, %v1352_v4  ;;  %v2130_v30 = vsub.f32 %v2042_v18, %v2003_v53  ;;  %v638_v31 = vmul.f32 1.442695, %v637_v43 }
 0x176   : > { %v1356_v45 = vpop.eup %1355  ;;  %v457_v32 = vadd.f32 %v456_v52, %v428_v42  ;;  %1369 = vlog2.f32 %v929_v44  ;;  %v746_v33 = vadd.f32 %v745_v23, %v715_v28  ;;  %v776_v61 = vmul.f32 0.6931472, %v1354_v25  ;;  %v594_v25 = vpop.permute.xlu0 %593 }
 0x177   : > { %v1358_v0 = vpop.eup %1357  ;;  %v481_v36 = vsel %vm478_vm11, 0.0, %v480_v26  ;;  %v487_v34 = vmul.f32 0.6931472, %v2097_v20  ;;  %vm510_vm12 = vcmp.le.f32.partialorder %v503_v14, -0.001  ;;  %1371 = vlog2.f32 %v547_v55 }
 0x178   : > { %v459_v47 = vadd.f32 %v458_v6, %v457_v32  ;;  %v807_v39 = vmul.f32 0.6931472, %v1356_v45  ;;  %v669_v40 = vmul.f32 1.442695, %v668_v29  ;;  %v699_v48 = vsub.f32 0.0, %v2130_v30 }
 0x179   : > { %1373 = vpow2.f32 %v638_v31  ;;  %v489_v18 = vmul.f32 %v481_v36, %v2029_v7  ;;  %v2137_v49 = vsub.f32 %v2069_v16, %v2003_v53  ;;  %v777_v54 = vadd.f32 %v776_v61, %v746_v33 }
 0x17a   : > { %v1360_v50 = vpop.eup %1359  ;;  %v838_v57 = vmul.f32 0.6931472, %v1358_v0  ;;  %vm509_vm13 = vcmp.ge.f32.partialorder %v503_v14, 0.001  ;;  %v511_v51 = vsel %vm510_vm12, 1.0, %v1644_v21  ;;  %v488_v38 = vadd.f32 %v487_v34, %v459_v47  ;;  %v625_v47 = vpop.permute.xlu0 %624 }
 0x17b   : > { %v1362_v46 = vpop.eup %1361  ;;  %v808_v59 = vadd.f32 %v807_v39, %v777_v54  ;;  %v534_v60 = vsub.f32 %v532_v17, %v2056_v35  ;;  %v869_v62 = vmul.f32 0.6931472, %v1360_v50  ;;  %1375 = vpow2.f32 %v669_v40 }
 0x17c   : > { %v1364_v20 = vpop.eup %1363  ;;  %v700_v7 = vmul.f32 1.442695, %v699_v48  ;;  %v518_v9 = vmul.f32 0.6931472, %v1362_v46  ;;  %v490_v52 = vadd.f32 %v489_v18, %v488_v38  ;;  %v512_v63 = vsel %vm509_vm13, 0.0, %v511_v51 }
 0x17d   : > { %v1366_v27 = vpop.eup %1365  ;;  %v578_v16 = vadd.f32 1.0, %v1364_v20  ;;  %v730_v8 = vsub.f32 0.0, %v2137_v49  ;;  %v839_v10 = vadd.f32 %v838_v57, %v808_v59  ;;  %vm541_vm14 = vcmp.le.f32.partialorder %v534_v60, -0.001 }
 0x17e   : > { %v1368_v1 = vpop.eup %1367  ;;  %v609_v15 = vadd.f32 1.0, %v1366_v27  ;;  %1377 = vpow2.f32 %v700_v7  ;;  %v520_v4 = vmul.f32 %v512_v63, %v2067_v11  ;;  %v519_v17 = vadd.f32 %v518_v9, %v490_v52 }
 0x17f   : > { %v870_v56 = vadd.f32 %v869_v62, %v839_v10  ;;  %v900_v41 = vmul.f32 0.6931472, %v1368_v1  ;;  %1379 = vlog2.f32 %v578_v16  ;;  %v731_v42 = vmul.f32 1.442695, %v730_v8 }
 0x180   : > { %v1370_v13 = vpop.eup %1369  ;;  %vm540_vm15 = vcmp.ge.f32.partialorder %v534_v60, 0.001  ;;  %v542_v23 = vsel %vm541_vm14, 1.0, %v1644_v21  ;;  %1381 = vlog2.f32 %v609_v15  ;;  %v2145_v28 = vsub.f32 %v754_v37, %v2003_v53 }
 0x181   : > { %v1372_v43 = vpop.eup %1371  ;;  %v931_v44 = vmul.f32 0.6931472, %v1370_v13  ;;  %v901_v6 = vadd.f32 %v900_v41, %v870_v56  ;;  %v521_v29 = vadd.f32 %v520_v4, %v519_v17  ;;  %1383 = vpow2.f32 %v731_v42 }
 0x182   : > { %v549_v26 = vmul.f32 0.6931472, %v1372_v43  ;;  %v543_v14 = vsel %vm540_vm15, 0.0, %v542_v23  ;;  %v1645_v31 = vmov 0.0   ;;  %v2152_v33 = vsub.f32 %v785_v3, %v2003_v53  ;;  %v878_v43 = vpop.permute.xlu0 %877 }
 0x183   : > { %v1374_v22 = vpop.eup %1373  ;;  %v932_v55 = vadd.f32 %v931_v44, %v901_v6  ;;  %v2149_v32 = vsel %vm322_vm0, 1.0, %v1645_v31  ;;  %v596_v61 = vsub.f32 %v594_v25, %v2056_v35  ;;  %v551_v34 = vmul.f32 %v543_v14, %v2082_v12 }
 0x184   : > { %v640_v11 = vadd.f32 1.0, %v1374_v22  ;;  %v761_v37 = vsub.f32 0.0, %v2145_v28  ;;  %v550_v39 = vadd.f32 %v549_v26, %v521_v29  ;;  %v792_v46 = vsub.f32 0.0, %v2152_v33 }
 0x185   : > { %v1376_v45 = vpop.eup %1375  ;;  %vm603_vm0 = vcmp.le.f32.partialorder %v596_v61, -0.001  ;;  %v627_v54 = vsub.f32 %v625_v47, %v2056_v35  ;;  %vm602_vm3 = vcmp.ge.f32.partialorder %v596_v61, 0.001  ;;  %v2174_v22 = vsub.f32 %v878_v43, %v2003_v53 }
 0x186   : > { %v671_v50 = vadd.f32 1.0, %v1376_v45  ;;  %1385 = vlog2.f32 %v640_v11  ;;  %v762_v12 = vmul.f32 1.442695, %v761_v37  ;;  %v552_v20 = vadd.f32 %v551_v34, %v550_v39  ;;  %v718_v39 = vpop.permute.xlu0 %717 }
 0x187   : > { %v604_v59 = vsel %vm603_vm0, 1.0, %v1644_v21  ;;  %v793_v7 = vmul.f32 1.442695, %v792_v46  ;;  %vm634_vm4 = vcmp.le.f32.partialorder %v627_v54, -0.001 }
 0x188   : > { %v1378_v5 = vpop.eup %1377  ;;  %1387 = vlog2.f32 %v671_v50  ;;  %v605_v8 = vsel %vm602_vm3, 0.0, %v604_v59  ;;  %vm633_vm5 = vcmp.ge.f32.partialorder %v627_v54, 0.001  ;;  %v635_v56 = vsel %vm634_vm4, 1.0, %v1644_v21 }
 0x189   : > { %v1380_v18 = vpop.eup %1379  ;;  %v702_v51 = vadd.f32 1.0, %v1378_v5  ;;  %1389 = vpow2.f32 %v762_v12  ;;  %v613_v42 = vmul.f32 %v605_v8, %v2103_v24  ;;  %v636_v23 = vsel %vm633_vm5, 0.0, %v635_v56 }
 0x18a   : > { %v1382_v38 = vpop.eup %1381  ;;  %v580_v27 = vmul.f32 0.6931472, %v1380_v18  ;;  %v644_v14 = vmul.f32 %v636_v23, %v2115_v2  ;;  %v885_v24 = vsub.f32 0.0, %v2174_v22 }
 0x18b   : > { %v1384_v1 = vpop.eup %1383  ;;  %v611_v63 = vmul.f32 0.6931472, %v1382_v38  ;;  %1391 = vlog2.f32 %v702_v51 }
 0x18c   : > { %v581_v52 = vadd.f32 %v580_v27, %v552_v20  ;;  %v733_v13 = vadd.f32 1.0, %v1384_v1  ;;  %1393 = vpow2.f32 %v793_v7  ;;  %v886_v37 = vmul.f32 1.442695, %v885_v24  ;;  %v780_v7 = vpop.permute.xlu0 %779 }
 0x18e   : > { %1395 = vlog2.f32 %v733_v13  ;;  %v782_v13 = vsub.f32 %v780_v7, %v2056_v35 }
 0x190   : > { %v1386_v15 = vpop.eup %1385  ;;  %vm789_vm12 = vcmp.le.f32.partialorder %v782_v13, -0.001  ;;  %vm788_vm13 = vcmp.ge.f32.partialorder %v782_v13, 0.001 }
 0x191   : > { %v642_v25 = vmul.f32 0.6931472, %v1386_v15 }
 0x192   : > { %v1388_v29 = vpop.eup %1387 }
 0x193   : > { %v673_v61 = vmul.f32 0.6931472, %v1388_v29 }
 0x19c   : > { %v959_v0 = vpop.xlane.xlu1 %958 }
 0x19d   : > { %v960_v36 = vsub.f32 %v932_v55, %v959_v0  ;;  %v1390_v0 = vpop.eup %1389 }
 0x19e   : > { %v1392_v34 = vpop.eup %1391  ;;  %v764_v2 = vadd.f32 1.0, %v1390_v0 }
 0x19f   : > { %v961_v40 = vmul.f32 %v2149_v32, %v960_v36  ;;  %v1394_v50 = vpop.eup %1393 }
 0x1a0   : > { %v563_v48 = vpop.permute.xlu1 %562  ;;  %v1396_v12 = vpop.eup %1395  ;;  %v795_v38 = vadd.f32 1.0, %v1394_v50 }
 0x1a1   : > { %v565_v57 = vsub.f32 %v563_v48, %v2056_v35  ;;  %963 = vrot.lane.b32.xlu0 %v961_v40, %s1646_s29  ;;  %v704_v48 = vmul.f32 0.6931472, %v1392_v34 }
 0x1a3   : > { %vm571_vm1 = vcmp.ge.f32.partialorder %v565_v57, 0.001  ;;  %vm572_vm2 = vcmp.le.f32.partialorder %v565_v57, -0.001  ;;  %v720_v57 = vsub.f32 %v718_v39, %v2056_v35 }
 0x1a4   : > { %v573_v60 = vsel %vm572_vm2, 1.0, %v1644_v21  ;;  %v816_v62 = vpop.permute.xlu1 %815 }
 0x1a5   : > { %v574_v9 = vsel %vm571_vm1, 0.0, %v573_v60  ;;  %v2164_v3 = vsub.f32 %v816_v62, %v2003_v53  ;;  %vm727_vm10 = vcmp.le.f32.partialorder %v720_v57, -0.001  ;;  %vm726_vm11 = vcmp.ge.f32.partialorder %v720_v57, 0.001 }
 0x1a6   : > { %v582_v16 = vmul.f32 %v574_v9, %v2095_v19  ;;  %v728_v8 = vsel %vm727_vm10, 1.0, %v1644_v21  ;;  %vm978_vm10 = vcmask 883712  }
 0x1a7   : > { %v823_v10 = vsub.f32 0.0, %v2164_v3 }
 0x1a8   : > { %v583_v41 = vadd.f32 %v582_v16, %v581_v52  ;;  %v735_v52 = vmul.f32 0.6931472, %v1396_v12 }
 0x1a9   : > { %v824_v4 = vmul.f32 1.442695, %v823_v10  ;;  %v847_v17 = vpop.permute.xlu1 %846 }
 0x1aa   : > { %v612_v44 = vadd.f32 %v611_v63, %v583_v41  ;;  %v2171_v19 = vsub.f32 %v847_v17, %v2003_v53 }
 0x1ab   : > { %1397 = vpow2.f32 %v824_v4  ;;  %v729_v4 = vsel %vm726_vm11, 0.0, %v728_v8  ;;  %vm966_vm11 = vcmask 7168  }
 0x1ac   : > { %v614_v6 = vadd.f32 %v613_v42, %v612_v44  ;;  %v854_v26 = vsub.f32 0.0, %v2171_v19  ;;  %v737_v23 = vmul.f32 %v729_v4, %v2137_v49 }
 0x1ae   : > { %v855_v11 = vmul.f32 1.442695, %v854_v26  ;;  %v656_v55 = vpop.permute.xlu1 %655  ;;  %v643_v45 = vadd.f32 %v642_v25, %v614_v6 }
 0x1af   : > { %v658_v31 = vsub.f32 %v656_v55, %v2056_v35 }
 0x1b0   : > { %v645_v36 = vadd.f32 %v644_v14, %v643_v45  ;;  %1399 = vpow2.f32 %v855_v11 }
 0x1b1   : > { %vm664_vm6 = vcmp.ge.f32.partialorder %v658_v31, 0.001  ;;  %vm665_vm7 = vcmp.le.f32.partialorder %v658_v31, -0.001  ;;  %1401 = vpow2.f32 %v886_v37  ;;  %v873_v31 = vpop.permute.xlu0 %872 }
 0x1b2   : > { %v666_v47 = vsel %vm665_vm7, 1.0, %v1644_v21  ;;  %v674_v18 = vadd.f32 %v673_v61, %v645_v36  ;;  %1403 = vlog2.f32 %v764_v2  ;;  %v875_v2 = vsub.f32 %v873_v31, %v2056_v35 }
 0x1b3   : > { %v667_v40 = vsel %vm664_vm6, 0.0, %v666_v47  ;;  %v687_v5 = vpop.permute.xlu1 %686  ;;  %1405 = vlog2.f32 %v795_v38 }
 0x1b4   : > { %v675_v46 = vmul.f32 %v667_v40, %v2120_v58  ;;  %v689_v54 = vsub.f32 %v687_v5, %v2056_v35  ;;  %vm882_vm2 = vcmp.le.f32.partialorder %v875_v2, -0.001  ;;  %vm881_vm3 = vcmp.ge.f32.partialorder %v875_v2, 0.001 }
 0x1b5   : > { %v1398_v51 = vpop.eup %1397 }
 0x1b6   : > { %v676_v20 = vadd.f32 %v675_v46, %v674_v18  ;;  %vm695_vm8 = vcmp.ge.f32.partialorder %v689_v54, 0.001  ;;  %vm696_vm9 = vcmp.le.f32.partialorder %v689_v54, -0.001  ;;  %v826_v9 = vadd.f32 1.0, %v1398_v51 }
 0x1b7   : > { %v697_v27 = vsel %vm696_vm9, 1.0, %v1644_v21 }
 0x1b8   : > { %v698_v59 = vsel %vm695_vm8, 0.0, %v697_v27  ;;  %v705_v60 = vadd.f32 %v704_v48, %v676_v20  ;;  %v909_v62 = vpop.permute.xlu1 %908  ;;  %1407 = vlog2.f32 %v826_v9 }
 0x1b9   : > { %v706_v58 = vmul.f32 %v698_v59, %v2130_v30  ;;  %v2187_v1 = vsub.f32 %v909_v62, %v2003_v53  ;;  %v883_v62 = vsel %vm882_vm2, 1.0, %v1644_v21 }
 0x1ba   : > { %v1400_v63 = vpop.eup %1399 }
 0x1bb   : > { %v916_v16 = vsub.f32 0.0, %v2187_v1  ;;  %v707_v10 = vadd.f32 %v706_v58, %v705_v60  ;;  %v857_v15 = vadd.f32 1.0, %v1400_v63  ;;  %v1402_v17 = vpop.eup %1401 }
 0x1bc   : > { %v1404_v44 = vpop.eup %1403  ;;  %v888_v26 = vadd.f32 1.0, %v1402_v17 }
 0x1bd   : > { %v917_v56 = vmul.f32 1.442695, %v916_v16  ;;  %v940_v41 = vpop.permute.xlu1 %939  ;;  %v736_v43 = vadd.f32 %v735_v52, %v707_v10  ;;  %v766_v14 = vmul.f32 0.6931472, %v1404_v44  ;;  %v1406_v24 = vpop.eup %1405 }
 0x1be   : > { %v2193_v30 = vsub.f32 %v940_v41, %v2003_v53  ;;  %v790_v53 = vsel %vm789_vm12, 1.0, %v1644_v21  ;;  %v797_v36 = vmul.f32 0.6931472, %v1406_v24 }
 0x1bf   : > { %1409 = vpow2.f32 %v917_v56  ;;  %v738_v11 = vadd.f32 %v737_v23, %v736_v43  ;;  %v791_v45 = vsel %vm788_vm13, 0.0, %v790_v53 }
 0x1c0   : > { %v947_v42 = vsub.f32 0.0, %v2193_v30  ;;  %1411 = vlog2.f32 %v857_v15  ;;  %v799_v50 = vmul.f32 %v791_v45, %v2152_v33 }
 0x1c1   : > { %v767_v34 = vadd.f32 %v766_v14, %v738_v11 }
 0x1c2   : > { %v948_v25 = vmul.f32 1.442695, %v947_v42  ;;  %v749_v6 = vpop.permute.xlu1 %748  ;;  %v1408_v61 = vpop.eup %1407 }
 0x1c3   : > { %v751_v29 = vsub.f32 %v749_v6, %v2056_v35  ;;  %v828_v18 = vmul.f32 0.6931472, %v1408_v61 }
 0x1c4   : > { %1413 = vpow2.f32 %v948_v25 }
 0x1c5   : > { %vm757_vm14 = vcmp.ge.f32.partialorder %v751_v29, 0.001  ;;  %vm758_vm15 = vcmp.le.f32.partialorder %v751_v29, -0.001  ;;  %1415 = vlog2.f32 %v888_v26 }
 0x1c6   : > { %v759_v55 = vsel %vm758_vm15, 1.0, %v1644_v21 }
 0x1c7   : > { %v760_v49 = vsel %vm757_vm14, 0.0, %v759_v55  ;;  %v811_v0 = vpop.permute.xlu1 %810 }
 0x1c8   : > { %v768_v37 = vmul.f32 %v760_v49, %v2145_v28  ;;  %v813_v47 = vsub.f32 %v811_v0, %v2056_v35 }
 0x1c9   : > { %v1410_v39 = vpop.eup %1409 }
 0x1ca   : > { %v919_v40 = vadd.f32 1.0, %v1410_v39  ;;  %v769_v5 = vadd.f32 %v768_v37, %v767_v34  ;;  %vm819_vm0 = vcmp.ge.f32.partialorder %v813_v47, 0.001  ;;  %vm820_vm1 = vcmp.le.f32.partialorder %v813_v47, -0.001  ;;  %v1412_v12 = vpop.eup %1411 }
 0x1cb   : > { %v821_v48 = vsel %vm820_vm1, 1.0, %v1644_v21  ;;  %v859_v27 = vmul.f32 0.6931472, %v1412_v12 }
 0x1cc   : > { %1417 = vlog2.f32 %v919_v40  ;;  %v798_v46 = vadd.f32 %v797_v36, %v769_v5  ;;  %v822_v54 = vsel %vm819_vm0, 0.0, %v821_v48  ;;  %v842_v57 = vpop.permute.xlu1 %841 }
 0x1cd   : > { %v844_v28 = vsub.f32 %v842_v57, %v2056_v35  ;;  %v830_v33 = vmul.f32 %v822_v54, %v2164_v3  ;;  %v884_v3 = vsel %vm881_vm3, 0.0, %v883_v62 }
 0x1ce   : > { %v1414_v20 = vpop.eup %1413  ;;  %v800_v51 = vadd.f32 %v799_v50, %v798_v46  ;;  %v892_v15 = vmul.f32 %v884_v3, %v2174_v22 }
 0x1cf   : > { %v950_v38 = vadd.f32 1.0, %v1414_v20  ;;  %vm850_vm4 = vcmp.ge.f32.partialorder %v844_v28, 0.001  ;;  %vm851_vm5 = vcmp.le.f32.partialorder %v844_v28, -0.001  ;;  %v1416_v58 = vpop.eup %1415 }
 0x1d0   : > { %v829_v59 = vadd.f32 %v828_v18, %v800_v51  ;;  %v852_v60 = vsel %vm851_vm5, 1.0, %v1644_v21  ;;  %v890_v8 = vmul.f32 0.6931472, %v1416_v58 }
 0x1d1   : > { %1419 = vlog2.f32 %v950_v38  ;;  %v853_v7 = vsel %vm850_vm4, 0.0, %v852_v60  ;;  %v904_v9 = vpop.permute.xlu1 %903 }
 0x1d2   : > { %v831_v52 = vadd.f32 %v830_v33, %v829_v59  ;;  %v861_v16 = vmul.f32 %v853_v7, %v2171_v19  ;;  %v906_v63 = vsub.f32 %v904_v9, %v2056_v35 }
 0x1d4   : > { %v860_v10 = vadd.f32 %v859_v27, %v831_v52  ;;  %vm912_vm6 = vcmp.ge.f32.partialorder %v906_v63, 0.001  ;;  %vm913_vm7 = vcmp.le.f32.partialorder %v906_v63, -0.001 }
 0x1d5   : > { %v914_v13 = vsel %vm913_vm7, 1.0, %v1644_v21 }
 0x1d6   : > { %v1418_v56 = vpop.eup %1417  ;;  %v862_v41 = vadd.f32 %v861_v16, %v860_v10  ;;  %v935_v4 = vpop.permute.xlu1 %934  ;;  %v915_v17 = vsel %vm912_vm6, 0.0, %v914_v13 }
 0x1d7   : > { %v937_v43 = vsub.f32 %v935_v4, %v2056_v35  ;;  %v921_v42 = vmul.f32 0.6931472, %v1418_v56  ;;  %v923_v23 = vmul.f32 %v915_v17, %v2187_v1 }
 0x1d8   : > { %v891_v44 = vadd.f32 %v890_v8, %v862_v41 }
 0x1d9   : > { %vm943_vm8 = vcmp.ge.f32.partialorder %v937_v43, 0.001  ;;  %vm944_vm9 = vcmp.le.f32.partialorder %v937_v43, -0.001 }
 0x1da   : > { %v893_v19 = vadd.f32 %v892_v15, %v891_v44  ;;  %v945_v25 = vsel %vm944_vm9, 1.0, %v1644_v21 }
 0x1db   : > { %v1420_v6 = vpop.eup %1419  ;;  %v946_v26 = vsel %vm943_vm8, 0.0, %v945_v25 }
 0x1dc   : > { %v922_v29 = vadd.f32 %v921_v42, %v893_v19  ;;  %v952_v53 = vmul.f32 0.6931472, %v1420_v6  ;;  %v954_v14 = vmul.f32 %v946_v26, %v2193_v30 }
 0x1de   : > { %v924_v22 = vadd.f32 %v923_v23, %v922_v29 }
 0x1e0   : > { %v953_v11 = vadd.f32 %v952_v53, %v924_v22 }
 0x1e2   : > { %v955_v35 = vadd.f32 %v954_v14, %v953_v11 }
 0x1e4   : > { %v977_v24 = vmul.f32 %v2149_v32, %v955_v35 }
 0x1e6   : > { %v979_v55 = vsel %vm978_vm10, %v977_v24, 0.0 }
 0x1e7   : > { %980 = vadd.xlane.f32.xlu0 %v979_v55 }
 0x213   : > { %v964_v1 = vpop.permute.xlu0 %963 }
 0x214   : > { %v967_v45 = vsel %vm966_vm11, %v964_v1, 0.0 }
 0x215   : > { %968 = vadd.xlane.f32.xlu1 %v967_v45 }
 0x274   : > { %v981_v21 = vpop.xlane.xlu0 %980 }
 0x275   : > { %v982_v31 = vrot.slane %v981_v21, 4 }
 0x277   : > { %v983_v49 = vadd.f32 %v982_v31, %v981_v21 }
 0x279   : > { %v984_v30 = vrot.slane %v983_v49, 2 }
 0x27b   : > { %v985_v34 = vadd.f32 %v984_v30, %v983_v49 }
 0x27d   : > { %v986_v47 = vrot.slane %v985_v34, 1 }
 0x27f   : > { %v987_v2 = vadd.f32 %v986_v47, %v985_v34 }
 0x2a2   : > { %v969_v0 = vpop.xlane.xlu1 %968 }
 0x2a3   : > { %v970_v61 = vrot.slane %v969_v0, 4 }
 0x2a5   : > { %v971_v36 = vadd.f32 %v970_v61, %v969_v0 }
 0x2a7   : > { %v972_v32 = vrot.slane %v971_v36, 2 }
 0x2a9   : > { %v973_v37 = vadd.f32 %v972_v32, %v971_v36 }
 0x2ab   : > { %v974_v39 = vrot.slane %v973_v37, 1 }
 0x2ad   : > { %v975_v50 = vadd.f32 %v974_v39, %v973_v37 }
 0x2af   : > { %1150 = vpush %v975_v50 }
 0x2b0   : > { %1152 = vpush %v987_v2 }
 0x2e0   : > { %s1151_s9 = spop %1150 }
 0x2e1   : > { %s990_s18 = sadd.f32 %s1151_s9, %s989_s6  ;;  %s1153_s30 = spop %1152 }
 0x2e2   : > { %s994_s27 = sadd.f32 %s1153_s30, %s1144_s13 }
 0x2e3   : > { %992 = sst [smem:[#allocation2]] %s990_s18 }
 0x2e4   : > { %996 = sst [smem:[#allocation2 + $0x1]] %s994_s27 }
 0x2e5   : > { %999 = sst [smem:[#allocation11]] %s990_s18 }
 0x2e6   : > { %1002 = sst [smem:[#allocation11 + $0x1]] %s994_s27 }
 0x2e7   : > { %1552 = shalt.err (!%p1549_p1)
}
 0x2e8   : > { %s1648_s28 = smov [#allocation11]  }
 0x2e9   : > { %1166 = dma.smem_to_hbm (%p1184_p9), %s1648_s28, 16, %s2260_s4, [#allocation5]  }
 0x2ea   : > { %1582 = dma.done.wait (%p1184_p9), [#allocation5], 16  }
 0x2eb   : > { %1584 = vsyncadd (%p1184_p9), [#allocation5], 4294967280 }
 0x2ec   : > { %1016 = sfence }
 0x2ed PF: > { %p21_p8 = scmp.ge.s32.totalorder %s1696_s20, 5   ;;  %s2277_s15 = smov %s1591_s16 }
 0x2ee   : > { %s2278_s16 = smov %s1595_s17  ;;  %s2279_s17 = smov %s1706_s23 }
 0x2ef   : > { %s2280_s18 = smov %s1696_s20  ;;  %23 = sbr.rel (!%p21_p8) target bundleno = 8 (0x8), region = 120 }
 0x2f6   :  { %1022 = vsyncpa [#allocation4], 1 }
 0x2f7   :  { %1024 = vsyncpa [#allocation4 + $0x1], 1 }
 0x2f8   :  { %1025 = vsyncpa [#allocation7], 1 }
 0x2f9   :  { %1027 = vsyncpa [#allocation7 + $0x1], 1 }
 0x2fa   :  { %1028 = vsyncpa [#allocation10], 1 }
 0x2fb   :  { %1030 = vsyncpa [#allocation10 + $0x1], 1 }
 0x2fc   :  { %1031 = vsyncpa [#allocation5], 1 }
 0x2fd   :  { %1033 = vsyncpa [#allocation5 + $0x1], 1 }

</bundles_post_ra>
